<compile_context>
chip_gen: v6e
topology: v6e:2x2x1
jax: 0.10.0
libtpu: 0.0.40
codegen_flags: <defaults>
</compile_context>

<pallas_src>
import functools

import jax
import jax.numpy as jnp
from jax import lax
from jax.experimental import pallas as pl
from jax.experimental.pallas import tpu as pltpu


def _round_up(x: int, m: int) -> int:
    return (x + m - 1) // m * m


def _embeddings_kernel(ids_ref, pos_ref,          # scalar-prefetch refs (SMEM)
                       w_hbm, p_hbm,              # embedding tables (HBM, pl.ANY)
                       gamma_ref, beta_ref,       # LayerNorm params (1, H), resident
                       out_ref,                   # output block (bt, H)
                       wbuf, pbuf, sem,           # scratch: (2,bt,H) x2, DMA sems (2,2)
                       *, eps: float, block_tokens: int):
    i = pl.program_id(0)
    n = pl.num_programs(0)

    def issue_block(blk, slot):
        base = blk * block_tokens

        def body(t, carry):
            tok = ids_ref[base + t]
            pltpu.make_async_copy(w_hbm.at[tok], wbuf.at[slot, t],
                                  sem.at[slot, 0]).start()
            p = pos_ref[base + t]
            pltpu.make_async_copy(p_hbm.at[p], pbuf.at[slot, t],
                                  sem.at[slot, 1]).start()
            return carry

        lax.fori_loop(0, block_tokens, body, 0, unroll=8)

    # Prime slot 0 on the very first step.
    @pl.when(i == 0)
    def _():
        issue_block(0, 0)

    # Prefetch next block's rows into the other slot (indices already in SMEM).
    @pl.when(i + 1 < n)
    def _():
        issue_block(i + 1, (i + 1) & 1)

    slot = i & 1

    # Aggregate wait: one descriptor covering the whole (bt, H) slab per table
    # (each row copy signaled H*itemsize bytes on this slot's semaphore).
    pltpu.make_async_copy(wbuf.at[slot], wbuf.at[slot], sem.at[slot, 0]).wait()
    pltpu.make_async_copy(pbuf.at[slot], pbuf.at[slot], sem.at[slot, 1]).wait()

    # word_embeddings[token] + position_embeddings[pos], then LayerNorm over H
    # (f32 math, biased variance, single-pass sums).
    x = wbuf[slot].astype(jnp.float32) + pbuf[slot].astype(jnp.float32)
    inv_h = jnp.float32(1.0 / x.shape[-1])
    mean = jnp.sum(x, axis=-1, keepdims=True) * inv_h
    ex2 = jnp.sum(x * x, axis=-1, keepdims=True) * inv_h
    var = ex2 - mean * mean
    inv = lax.rsqrt(var + eps)
    y = ((x - mean) * inv * gamma_ref[...].astype(jnp.float32)
         + beta_ref[...].astype(jnp.float32))

    # Dropout is identity in eval mode.
    out_ref[...] = y.astype(out_ref.dtype)


def sinhala_embeddings(input_ids, position_ids, word_emb, pos_emb, gamma, beta,
                       *, eps: float = 1e-12, block_tokens: int = 64,
                       out_dtype=jnp.float32):
    """input_ids, position_ids: (B, S) int32.  Returns (B, S, H) `out_dtype`.

    `out_dtype` defaults to float32 (PyTorch parity); pass jnp.bfloat16 (and
    bf16 tables) to halve HBM traffic when the consumer accepts bf16.
    """
    B, S = input_ids.shape
    V, H = word_emb.shape

    ids = input_ids.reshape(-1).astype(jnp.int32)       # (B*S,)
    pos = position_ids.reshape(-1).astype(jnp.int32)    # (B*S,)
    n_tok = B * S

    # Tokens per grid step: multiple of 8 (full sublanes), capped by workload.
    bt = min(block_tokens, _round_up(n_tok, 8))
    bt = _round_up(bt, 8)
    n_pad = _round_up(n_tok, bt)
    if n_pad != n_tok:
        # Pad with token 0 / position 0 (valid rows); extra rows are dropped.
        ids = jnp.pad(ids, (0, n_pad - n_tok))
        pos = jnp.pad(pos, (0, n_pad - n_tok))
    n_blocks = n_pad // bt

    gamma2 = gamma.reshape(1, H)
    beta2 = beta.reshape(1, H)

    grid_spec = pltpu.PrefetchScalarGridSpec(
        num_scalar_prefetch=2,
        grid=(n_blocks,),
        in_specs=[
            pl.BlockSpec(memory_space=pl.ANY),                  # word table (HBM)
            pl.BlockSpec(memory_space=pl.ANY),                  # position table (HBM)
            pl.BlockSpec((1, H), lambda i, ids, pos: (0, 0)),   # gamma (resident)
            pl.BlockSpec((1, H), lambda i, ids, pos: (0, 0)),   # beta  (resident)
        ],
        out_specs=pl.BlockSpec((bt, H), lambda i, ids, pos: (i, 0)),
        scratch_shapes=[
            pltpu.VMEM((2, bt, H), word_emb.dtype),   # double-buffered word rows
            pltpu.VMEM((2, bt, H), pos_emb.dtype),    # double-buffered position rows
            pltpu.SemaphoreType.DMA((2, 2)),          # [slot, table] gather sems
        ],
    )

    out_flat = pl.pallas_call(
        functools.partial(_embeddings_kernel, eps=eps, block_tokens=bt),
        out_shape=jax.ShapeDtypeStruct((n_pad, H), out_dtype),
        grid_spec=grid_spec,
        compiler_params=pltpu.CompilerParams(
            # "arbitrary": cross-step double buffering (slot priming at i == 0)
            # requires strictly sequential grid iteration on one TensorCore.
            dimension_semantics=("arbitrary",),
            vmem_limit_bytes=32 * 1024 * 1024,
        ),
    )(ids, pos, word_emb, pos_emb, gamma2, beta2)

    return out_flat[:n_tok].reshape(B, S, H)


def _reference(input_ids, position_ids, word_emb, pos_emb, gamma, beta, eps):
    we = word_emb[input_ids]
    pe = pos_emb[position_ids]
    x = we + pe
    mean = jnp.mean(x, axis=-1, keepdims=True)
    var = jnp.mean((x - mean) ** 2, axis=-1, keepdims=True)
    return (x - mean) / jnp.sqrt(var + eps) * gamma + beta


if __name__ == "__main__":
    # Small config consistent with the module (scaled down).
    vocab_size = 64
    max_position_embeddings = 32
    hidden_size = 128
    pad_token_id = 0
    eps = 1e-12
    B, S = 2, 8

    key = jax.random.PRNGKey(0)
    k_w, k_p, k_ids = jax.random.split(key, 3)

    # Deterministic parameter init (initializer_range = 0.02); padding row
    # zeroed to match nn.Embedding(padding_idx=pad_token_id).
    word_emb = 0.02 * jax.random.normal(k_w, (vocab_size, hidden_size), jnp.float32)
    word_emb = word_emb.at[pad_token_id].set(0.0)
    pos_emb = 0.02 * jax.random.normal(k_p, (max_position_embeddings, hidden_size),
                                       jnp.float32)
    gamma = jnp.ones((hidden_size,), jnp.float32)
    beta = jnp.zeros((hidden_size,), jnp.float32)

    input_ids = jax.random.randint(k_ids, (B, S), 0, vocab_size, dtype=jnp.int32)
    # Default position_ids = arange(seq_length) broadcast over batch.
    position_ids = jnp.broadcast_to(jnp.arange(S, dtype=jnp.int32)[None, :], (B, S))

    ref = _reference(input_ids, position_ids, word_emb, pos_emb, gamma, beta, eps)

    # 1) Multi-block path (block_tokens=8 -> 2 grid steps) exercises the
    #    cross-step double-buffered gather pipeline.
    out_mb = sinhala_embeddings(input_ids, position_ids, word_emb, pos_emb,
                                gamma, beta, eps=eps, block_tokens=8)
    out_mb = jax.block_until_ready(out_mb)
    assert out_mb.shape == (B, S, hidden_size)
    assert jnp.allclose(out_mb, ref, atol=1e-5, rtol=1e-5), "multi-block mismatch"

    # 2) Default (single-block) path.
    out = sinhala_embeddings(input_ids, position_ids, word_emb, pos_emb,
                             gamma, beta, eps=eps)
    out = jax.block_until_ready(out)
    assert out.shape == (B, S, hidden_size)
    assert jnp.allclose(out, ref, atol=1e-5, rtol=1e-5), "mismatch vs reference"

    print("KERNEL_OK")
</pallas_src>

<mosaic_0001>
module attributes {stable_mosaic.version = 11 : i64} {
  func.func @_embeddings_kernel(%arg0: i32, %arg1: memref<16xi32, #tpu.memory_space<smem>>, %arg2: memref<16xi32, #tpu.memory_space<smem>>, %arg3: memref<64x128xf32, #tpu.memory_space<any>>, %arg4: memref<32x128xf32, #tpu.memory_space<any>>, %arg5: memref<1x128xf32, #tpu.memory_space<vmem>>, %arg6: memref<1x128xf32, #tpu.memory_space<vmem>>, %arg7: memref<8x128xf32, #tpu.memory_space<vmem>>, %arg8: memref<2x8x128xf32, #tpu.memory_space<vmem>>, %arg9: memref<2x8x128xf32, #tpu.memory_space<vmem>>, %arg10: memref<2x2x!tpu.dma_semaphore, #tpu.memory_space<semaphore_mem>>) attributes {dimension_semantics = [#tpu.dimension_semantics<arbitrary>], iteration_bounds = array<i64: 2>, scalar_prefetch = 2 : i64, scratch_operands = 3 : i64, tpu.core_type = #tpu.core_type<tc>, window_params = [{}, {}, {pipeline_mode = #tpu.pipeline_mode<synchronous>, transform_indices = @transform_2, window_bounds = array<i64: 1, 128>}, {pipeline_mode = #tpu.pipeline_mode<synchronous>, transform_indices = @transform_3, window_bounds = array<i64: 1, 128>}, {transform_indices = @transform_4, window_bounds = array<i64: 8, 128>}]} {
    %c0_i32 = arith.constant 0 : i32
    %0 = arith.cmpi eq, %arg0, %c0_i32 : i32
    %1 = arith.extui %0 : i1 to i32
    %c0_i32_0 = arith.constant 0 : i32
    %2 = arith.cmpi ne, %1, %c0_i32_0 : i32
    scf.if %2 {
      %c0_i32_26 = arith.constant 0 : i32
      %c0_i32_27 = arith.constant 0 : i32
      %52 = arith.addi %c0_i32_27, %c0_i32_26 : i32
      %53 = arith.index_cast %52 : i32 to index
      %54 = memref.load %arg1[%53] : memref<16xi32, #tpu.memory_space<smem>>
      %c0_i32_28 = arith.constant 0 : i32
      %c0_i32_29 = arith.constant 0 : i32
      %c0_i32_30 = arith.constant 0 : i32
      %c0_i32_31 = arith.constant 0 : i32
      %55 = tpu.memref_slice %arg3[%54, %c0_i32_31] : memref<64x128xf32, #tpu.memory_space<any>> -> memref<1x128xf32, #tpu.memory_space<any>>
      %56 = tpu.memref_squeeze %55 : memref<1x128xf32, #tpu.memory_space<any>> -> memref<128xf32, #tpu.memory_space<any>>
      %c0_i32_32 = arith.constant 0 : i32
      %57 = tpu.memref_slice %arg8[%c0_i32_28, %c0_i32_26, %c0_i32_32] : memref<2x8x128xf32, #tpu.memory_space<vmem>> -> memref<1x1x128xf32, #tpu.memory_space<vmem>>
      %58 = tpu.memref_squeeze %57 : memref<1x1x128xf32, #tpu.memory_space<vmem>> -> memref<128xf32, #tpu.memory_space<vmem>>
      %59 = tpu.memref_slice %arg10[%c0_i32_29, %c0_i32_30] : memref<2x2x!tpu.dma_semaphore, #tpu.memory_space<semaphore_mem>> -> memref<1x1x!tpu.dma_semaphore, #tpu.memory_space<semaphore_mem>>
      %60 = tpu.memref_squeeze %59 : memref<1x1x!tpu.dma_semaphore, #tpu.memory_space<semaphore_mem>> -> memref<!tpu.dma_semaphore, #tpu.memory_space<semaphore_mem>>
      tpu.enqueue_dma source(%56 : memref<128xf32, #tpu.memory_space<any>>) target(%58 : memref<128xf32, #tpu.memory_space<vmem>>) target_semaphore(%60 : memref<!tpu.dma_semaphore, #tpu.memory_space<semaphore_mem>>)
      %c0_i32_33 = arith.constant 0 : i32
      %61 = arith.addi %c0_i32_33, %c0_i32_26 : i32
      %62 = arith.index_cast %61 : i32 to index
      %63 = memref.load %arg2[%62] : memref<16xi32, #tpu.memory_space<smem>>
      %c0_i32_34 = arith.constant 0 : i32
      %c0_i32_35 = arith.constant 0 : i32
      %c1_i32_36 = arith.constant 1 : i32
      %c0_i32_37 = arith.constant 0 : i32
      %64 = tpu.memref_slice %arg4[%63, %c0_i32_37] : memref<32x128xf32, #tpu.memory_space<any>> -> memref<1x128xf32, #tpu.memory_space<any>>
      %65 = tpu.memref_squeeze %64 : memref<1x128xf32, #tpu.memory_space<any>> -> memref<128xf32, #tpu.memory_space<any>>
      %c0_i32_38 = arith.constant 0 : i32
      %66 = tpu.memref_slice %arg9[%c0_i32_34, %c0_i32_26, %c0_i32_38] : memref<2x8x128xf32, #tpu.memory_space<vmem>> -> memref<1x1x128xf32, #tpu.memory_space<vmem>>
      %67 = tpu.memref_squeeze %66 : memref<1x1x128xf32, #tpu.memory_space<vmem>> -> memref<128xf32, #tpu.memory_space<vmem>>
      %68 = tpu.memref_slice %arg10[%c0_i32_35, %c1_i32_36] : memref<2x2x!tpu.dma_semaphore, #tpu.memory_space<semaphore_mem>> -> memref<1x1x!tpu.dma_semaphore, #tpu.memory_space<semaphore_mem>>
      %69 = tpu.memref_squeeze %68 : memref<1x1x!tpu.dma_semaphore, #tpu.memory_space<semaphore_mem>> -> memref<!tpu.dma_semaphore, #tpu.memory_space<semaphore_mem>>
      tpu.enqueue_dma source(%65 : memref<128xf32, #tpu.memory_space<any>>) target(%67 : memref<128xf32, #tpu.memory_space<vmem>>) target_semaphore(%69 : memref<!tpu.dma_semaphore, #tpu.memory_space<semaphore_mem>>)
      %c1_i32_39 = arith.constant 1 : i32
      %c0_i32_40 = arith.constant 0 : i32
      %70 = arith.addi %c0_i32_40, %c1_i32_39 : i32
      %71 = arith.index_cast %70 : i32 to index
      %72 = memref.load %arg1[%71] : memref<16xi32, #tpu.memory_space<smem>>
      %c0_i32_41 = arith.constant 0 : i32
      %c0_i32_42 = arith.constant 0 : i32
      %c0_i32_43 = arith.constant 0 : i32
      %c0_i32_44 = arith.constant 0 : i32
      %73 = tpu.memref_slice %arg3[%72, %c0_i32_44] : memref<64x128xf32, #tpu.memory_space<any>> -> memref<1x128xf32, #tpu.memory_space<any>>
      %74 = tpu.memref_squeeze %73 : memref<1x128xf32, #tpu.memory_space<any>> -> memref<128xf32, #tpu.memory_space<any>>
      %c0_i32_45 = arith.constant 0 : i32
      %75 = tpu.memref_slice %arg8[%c0_i32_41, %c1_i32_39, %c0_i32_45] : memref<2x8x128xf32, #tpu.memory_space<vmem>> -> memref<1x1x128xf32, #tpu.memory_space<vmem>>
      %76 = tpu.memref_squeeze %75 : memref<1x1x128xf32, #tpu.memory_space<vmem>> -> memref<128xf32, #tpu.memory_space<vmem>>
      %77 = tpu.memref_slice %arg10[%c0_i32_42, %c0_i32_43] : memref<2x2x!tpu.dma_semaphore, #tpu.memory_space<semaphore_mem>> -> memref<1x1x!tpu.dma_semaphore, #tpu.memory_space<semaphore_mem>>
      %78 = tpu.memref_squeeze %77 : memref<1x1x!tpu.dma_semaphore, #tpu.memory_space<semaphore_mem>> -> memref<!tpu.dma_semaphore, #tpu.memory_space<semaphore_mem>>
      tpu.enqueue_dma source(%74 : memref<128xf32, #tpu.memory_space<any>>) target(%76 : memref<128xf32, #tpu.memory_space<vmem>>) target_semaphore(%78 : memref<!tpu.dma_semaphore, #tpu.memory_space<semaphore_mem>>)
      %c0_i32_46 = arith.constant 0 : i32
      %79 = arith.addi %c0_i32_46, %c1_i32_39 : i32
      %80 = arith.index_cast %79 : i32 to index
      %81 = memref.load %arg2[%80] : memref<16xi32, #tpu.memory_space<smem>>
      %c0_i32_47 = arith.constant 0 : i32
      %c0_i32_48 = arith.constant 0 : i32
      %c1_i32_49 = arith.constant 1 : i32
      %c0_i32_50 = arith.constant 0 : i32
      %82 = tpu.memref_slice %arg4[%81, %c0_i32_50] : memref<32x128xf32, #tpu.memory_space<any>> -> memref<1x128xf32, #tpu.memory_space<any>>
      %83 = tpu.memref_squeeze %82 : memref<1x128xf32, #tpu.memory_space<any>> -> memref<128xf32, #tpu.memory_space<any>>
      %c0_i32_51 = arith.constant 0 : i32
      %84 = tpu.memref_slice %arg9[%c0_i32_47, %c1_i32_39, %c0_i32_51] : memref<2x8x128xf32, #tpu.memory_space<vmem>> -> memref<1x1x128xf32, #tpu.memory_space<vmem>>
      %85 = tpu.memref_squeeze %84 : memref<1x1x128xf32, #tpu.memory_space<vmem>> -> memref<128xf32, #tpu.memory_space<vmem>>
      %86 = tpu.memref_slice %arg10[%c0_i32_48, %c1_i32_49] : memref<2x2x!tpu.dma_semaphore, #tpu.memory_space<semaphore_mem>> -> memref<1x1x!tpu.dma_semaphore, #tpu.memory_space<semaphore_mem>>
      %87 = tpu.memref_squeeze %86 : memref<1x1x!tpu.dma_semaphore, #tpu.memory_space<semaphore_mem>> -> memref<!tpu.dma_semaphore, #tpu.memory_space<semaphore_mem>>
      tpu.enqueue_dma source(%83 : memref<128xf32, #tpu.memory_space<any>>) target(%85 : memref<128xf32, #tpu.memory_space<vmem>>) target_semaphore(%87 : memref<!tpu.dma_semaphore, #tpu.memory_space<semaphore_mem>>)
      %c2_i32_52 = arith.constant 2 : i32
      %c0_i32_53 = arith.constant 0 : i32
      %88 = arith.addi %c0_i32_53, %c2_i32_52 : i32
      %89 = arith.index_cast %88 : i32 to index
      %90 = memref.load %arg1[%89] : memref<16xi32, #tpu.memory_space<smem>>
      %c0_i32_54 = arith.constant 0 : i32
      %c0_i32_55 = arith.constant 0 : i32
      %c0_i32_56 = arith.constant 0 : i32
      %c0_i32_57 = arith.constant 0 : i32
      %91 = tpu.memref_slice %arg3[%90, %c0_i32_57] : memref<64x128xf32, #tpu.memory_space<any>> -> memref<1x128xf32, #tpu.memory_space<any>>
      %92 = tpu.memref_squeeze %91 : memref<1x128xf32, #tpu.memory_space<any>> -> memref<128xf32, #tpu.memory_space<any>>
      %c0_i32_58 = arith.constant 0 : i32
      %93 = tpu.memref_slice %arg8[%c0_i32_54, %c2_i32_52, %c0_i32_58] : memref<2x8x128xf32, #tpu.memory_space<vmem>> -> memref<1x1x128xf32, #tpu.memory_space<vmem>>
      %94 = tpu.memref_squeeze %93 : memref<1x1x128xf32, #tpu.memory_space<vmem>> -> memref<128xf32, #tpu.memory_space<vmem>>
      %95 = tpu.memref_slice %arg10[%c0_i32_55, %c0_i32_56] : memref<2x2x!tpu.dma_semaphore, #tpu.memory_space<semaphore_mem>> -> memref<1x1x!tpu.dma_semaphore, #tpu.memory_space<semaphore_mem>>
      %96 = tpu.memref_squeeze %95 : memref<1x1x!tpu.dma_semaphore, #tpu.memory_space<semaphore_mem>> -> memref<!tpu.dma_semaphore, #tpu.memory_space<semaphore_mem>>
      tpu.enqueue_dma source(%92 : memref<128xf32, #tpu.memory_space<any>>) target(%94 : memref<128xf32, #tpu.memory_space<vmem>>) target_semaphore(%96 : memref<!tpu.dma_semaphore, #tpu.memory_space<semaphore_mem>>)
      %c0_i32_59 = arith.constant 0 : i32
      %97 = arith.addi %c0_i32_59, %c2_i32_52 : i32
      %98 = arith.index_cast %97 : i32 to index
      %99 = memref.load %arg2[%98] : memref<16xi32, #tpu.memory_space<smem>>
      %c0_i32_60 = arith.constant 0 : i32
      %c0_i32_61 = arith.constant 0 : i32
      %c1_i32_62 = arith.constant 1 : i32
      %c0_i32_63 = arith.constant 0 : i32
      %100 = tpu.memref_slice %arg4[%99, %c0_i32_63] : memref<32x128xf32, #tpu.memory_space<any>> -> memref<1x128xf32, #tpu.memory_space<any>>
      %101 = tpu.memref_squeeze %100 : memref<1x128xf32, #tpu.memory_space<any>> -> memref<128xf32, #tpu.memory_space<any>>
      %c0_i32_64 = arith.constant 0 : i32
      %102 = tpu.memref_slice %arg9[%c0_i32_60, %c2_i32_52, %c0_i32_64] : memref<2x8x128xf32, #tpu.memory_space<vmem>> -> memref<1x1x128xf32, #tpu.memory_space<vmem>>
      %103 = tpu.memref_squeeze %102 : memref<1x1x128xf32, #tpu.memory_space<vmem>> -> memref<128xf32, #tpu.memory_space<vmem>>
      %104 = tpu.memref_slice %arg10[%c0_i32_61, %c1_i32_62] : memref<2x2x!tpu.dma_semaphore, #tpu.memory_space<semaphore_mem>> -> memref<1x1x!tpu.dma_semaphore, #tpu.memory_space<semaphore_mem>>
      %105 = tpu.memref_squeeze %104 : memref<1x1x!tpu.dma_semaphore, #tpu.memory_space<semaphore_mem>> -> memref<!tpu.dma_semaphore, #tpu.memory_space<semaphore_mem>>
      tpu.enqueue_dma source(%101 : memref<128xf32, #tpu.memory_space<any>>) target(%103 : memref<128xf32, #tpu.memory_space<vmem>>) target_semaphore(%105 : memref<!tpu.dma_semaphore, #tpu.memory_space<semaphore_mem>>)
      %c3_i32 = arith.constant 3 : i32
      %c0_i32_65 = arith.constant 0 : i32
      %106 = arith.addi %c0_i32_65, %c3_i32 : i32
      %107 = arith.index_cast %106 : i32 to index
      %108 = memref.load %arg1[%107] : memref<16xi32, #tpu.memory_space<smem>>
      %c0_i32_66 = arith.constant 0 : i32
      %c0_i32_67 = arith.constant 0 : i32
      %c0_i32_68 = arith.constant 0 : i32
      %c0_i32_69 = arith.constant 0 : i32
      %109 = tpu.memref_slice %arg3[%108, %c0_i32_69] : memref<64x128xf32, #tpu.memory_space<any>> -> memref<1x128xf32, #tpu.memory_space<any>>
      %110 = tpu.memref_squeeze %109 : memref<1x128xf32, #tpu.memory_space<any>> -> memref<128xf32, #tpu.memory_space<any>>
      %c0_i32_70 = arith.constant 0 : i32
      %111 = tpu.memref_slice %arg8[%c0_i32_66, %c3_i32, %c0_i32_70] : memref<2x8x128xf32, #tpu.memory_space<vmem>> -> memref<1x1x128xf32, #tpu.memory_space<vmem>>
      %112 = tpu.memref_squeeze %111 : memref<1x1x128xf32, #tpu.memory_space<vmem>> -> memref<128xf32, #tpu.memory_space<vmem>>
      %113 = tpu.memref_slice %arg10[%c0_i32_67, %c0_i32_68] : memref<2x2x!tpu.dma_semaphore, #tpu.memory_space<semaphore_mem>> -> memref<1x1x!tpu.dma_semaphore, #tpu.memory_space<semaphore_mem>>
      %114 = tpu.memref_squeeze %113 : memref<1x1x!tpu.dma_semaphore, #tpu.memory_space<semaphore_mem>> -> memref<!tpu.dma_semaphore, #tpu.memory_space<semaphore_mem>>
      tpu.enqueue_dma source(%110 : memref<128xf32, #tpu.memory_space<any>>) target(%112 : memref<128xf32, #tpu.memory_space<vmem>>) target_semaphore(%114 : memref<!tpu.dma_semaphore, #tpu.memory_space<semaphore_mem>>)
      %c0_i32_71 = arith.constant 0 : i32
      %115 = arith.addi %c0_i32_71, %c3_i32 : i32
      %116 = arith.index_cast %115 : i32 to index
      %117 = memref.load %arg2[%116] : memref<16xi32, #tpu.memory_space<smem>>
      %c0_i32_72 = arith.constant 0 : i32
      %c0_i32_73 = arith.constant 0 : i32
      %c1_i32_74 = arith.constant 1 : i32
      %c0_i32_75 = arith.constant 0 : i32
      %118 = tpu.memref_slice %arg4[%117, %c0_i32_75] : memref<32x128xf32, #tpu.memory_space<any>> -> memref<1x128xf32, #tpu.memory_space<any>>
      %119 = tpu.memref_squeeze %118 : memref<1x128xf32, #tpu.memory_space<any>> -> memref<128xf32, #tpu.memory_space<any>>
      %c0_i32_76 = arith.constant 0 : i32
      %120 = tpu.memref_slice %arg9[%c0_i32_72, %c3_i32, %c0_i32_76] : memref<2x8x128xf32, #tpu.memory_space<vmem>> -> memref<1x1x128xf32, #tpu.memory_space<vmem>>
      %121 = tpu.memref_squeeze %120 : memref<1x1x128xf32, #tpu.memory_space<vmem>> -> memref<128xf32, #tpu.memory_space<vmem>>
      %122 = tpu.memref_slice %arg10[%c0_i32_73, %c1_i32_74] : memref<2x2x!tpu.dma_semaphore, #tpu.memory_space<semaphore_mem>> -> memref<1x1x!tpu.dma_semaphore, #tpu.memory_space<semaphore_mem>>
      %123 = tpu.memref_squeeze %122 : memref<1x1x!tpu.dma_semaphore, #tpu.memory_space<semaphore_mem>> -> memref<!tpu.dma_semaphore, #tpu.memory_space<semaphore_mem>>
      tpu.enqueue_dma source(%119 : memref<128xf32, #tpu.memory_space<any>>) target(%121 : memref<128xf32, #tpu.memory_space<vmem>>) target_semaphore(%123 : memref<!tpu.dma_semaphore, #tpu.memory_space<semaphore_mem>>)
      %c4_i32 = arith.constant 4 : i32
      %c0_i32_77 = arith.constant 0 : i32
      %124 = arith.addi %c0_i32_77, %c4_i32 : i32
      %125 = arith.index_cast %124 : i32 to index
      %126 = memref.load %arg1[%125] : memref<16xi32, #tpu.memory_space<smem>>
      %c0_i32_78 = arith.constant 0 : i32
      %c0_i32_79 = arith.constant 0 : i32
      %c0_i32_80 = arith.constant 0 : i32
      %c0_i32_81 = arith.constant 0 : i32
      %127 = tpu.memref_slice %arg3[%126, %c0_i32_81] : memref<64x128xf32, #tpu.memory_space<any>> -> memref<1x128xf32, #tpu.memory_space<any>>
      %128 = tpu.memref_squeeze %127 : memref<1x128xf32, #tpu.memory_space<any>> -> memref<128xf32, #tpu.memory_space<any>>
      %c0_i32_82 = arith.constant 0 : i32
      %129 = tpu.memref_slice %arg8[%c0_i32_78, %c4_i32, %c0_i32_82] : memref<2x8x128xf32, #tpu.memory_space<vmem>> -> memref<1x1x128xf32, #tpu.memory_space<vmem>>
      %130 = tpu.memref_squeeze %129 : memref<1x1x128xf32, #tpu.memory_space<vmem>> -> memref<128xf32, #tpu.memory_space<vmem>>
      %131 = tpu.memref_slice %arg10[%c0_i32_79, %c0_i32_80] : memref<2x2x!tpu.dma_semaphore, #tpu.memory_space<semaphore_mem>> -> memref<1x1x!tpu.dma_semaphore, #tpu.memory_space<semaphore_mem>>
      %132 = tpu.memref_squeeze %131 : memref<1x1x!tpu.dma_semaphore, #tpu.memory_space<semaphore_mem>> -> memref<!tpu.dma_semaphore, #tpu.memory_space<semaphore_mem>>
      tpu.enqueue_dma source(%128 : memref<128xf32, #tpu.memory_space<any>>) target(%130 : memref<128xf32, #tpu.memory_space<vmem>>) target_semaphore(%132 : memref<!tpu.dma_semaphore, #tpu.memory_space<semaphore_mem>>)
      %c0_i32_83 = arith.constant 0 : i32
      %133 = arith.addi %c0_i32_83, %c4_i32 : i32
      %134 = arith.index_cast %133 : i32 to index
      %135 = memref.load %arg2[%134] : memref<16xi32, #tpu.memory_space<smem>>
      %c0_i32_84 = arith.constant 0 : i32
      %c0_i32_85 = arith.constant 0 : i32
      %c1_i32_86 = arith.constant 1 : i32
      %c0_i32_87 = arith.constant 0 : i32
      %136 = tpu.memref_slice %arg4[%135, %c0_i32_87] : memref<32x128xf32, #tpu.memory_space<any>> -> memref<1x128xf32, #tpu.memory_space<any>>
      %137 = tpu.memref_squeeze %136 : memref<1x128xf32, #tpu.memory_space<any>> -> memref<128xf32, #tpu.memory_space<any>>
      %c0_i32_88 = arith.constant 0 : i32
      %138 = tpu.memref_slice %arg9[%c0_i32_84, %c4_i32, %c0_i32_88] : memref<2x8x128xf32, #tpu.memory_space<vmem>> -> memref<1x1x128xf32, #tpu.memory_space<vmem>>
      %139 = tpu.memref_squeeze %138 : memref<1x1x128xf32, #tpu.memory_space<vmem>> -> memref<128xf32, #tpu.memory_space<vmem>>
      %140 = tpu.memref_slice %arg10[%c0_i32_85, %c1_i32_86] : memref<2x2x!tpu.dma_semaphore, #tpu.memory_space<semaphore_mem>> -> memref<1x1x!tpu.dma_semaphore, #tpu.memory_space<semaphore_mem>>
      %141 = tpu.memref_squeeze %140 : memref<1x1x!tpu.dma_semaphore, #tpu.memory_space<semaphore_mem>> -> memref<!tpu.dma_semaphore, #tpu.memory_space<semaphore_mem>>
      tpu.enqueue_dma source(%137 : memref<128xf32, #tpu.memory_space<any>>) target(%139 : memref<128xf32, #tpu.memory_space<vmem>>) target_semaphore(%141 : memref<!tpu.dma_semaphore, #tpu.memory_space<semaphore_mem>>)
      %c5_i32 = arith.constant 5 : i32
      %c0_i32_89 = arith.constant 0 : i32
      %142 = arith.addi %c0_i32_89, %c5_i32 : i32
      %143 = arith.index_cast %142 : i32 to index
      %144 = memref.load %arg1[%143] : memref<16xi32, #tpu.memory_space<smem>>
      %c0_i32_90 = arith.constant 0 : i32
      %c0_i32_91 = arith.constant 0 : i32
      %c0_i32_92 = arith.constant 0 : i32
      %c0_i32_93 = arith.constant 0 : i32
      %145 = tpu.memref_slice %arg3[%144, %c0_i32_93] : memref<64x128xf32, #tpu.memory_space<any>> -> memref<1x128xf32, #tpu.memory_space<any>>
      %146 = tpu.memref_squeeze %145 : memref<1x128xf32, #tpu.memory_space<any>> -> memref<128xf32, #tpu.memory_space<any>>
      %c0_i32_94 = arith.constant 0 : i32
      %147 = tpu.memref_slice %arg8[%c0_i32_90, %c5_i32, %c0_i32_94] : memref<2x8x128xf32, #tpu.memory_space<vmem>> -> memref<1x1x128xf32, #tpu.memory_space<vmem>>
      %148 = tpu.memref_squeeze %147 : memref<1x1x128xf32, #tpu.memory_space<vmem>> -> memref<128xf32, #tpu.memory_space<vmem>>
      %149 = tpu.memref_slice %arg10[%c0_i32_91, %c0_i32_92] : memref<2x2x!tpu.dma_semaphore, #tpu.memory_space<semaphore_mem>> -> memref<1x1x!tpu.dma_semaphore, #tpu.memory_space<semaphore_mem>>
      %150 = tpu.memref_squeeze %149 : memref<1x1x!tpu.dma_semaphore, #tpu.memory_space<semaphore_mem>> -> memref<!tpu.dma_semaphore, #tpu.memory_space<semaphore_mem>>
      tpu.enqueue_dma source(%146 : memref<128xf32, #tpu.memory_space<any>>) target(%148 : memref<128xf32, #tpu.memory_space<vmem>>) target_semaphore(%150 : memref<!tpu.dma_semaphore, #tpu.memory_space<semaphore_mem>>)
      %c0_i32_95 = arith.constant 0 : i32
      %151 = arith.addi %c0_i32_95, %c5_i32 : i32
      %152 = arith.index_cast %151 : i32 to index
      %153 = memref.load %arg2[%152] : memref<16xi32, #tpu.memory_space<smem>>
      %c0_i32_96 = arith.constant 0 : i32
      %c0_i32_97 = arith.constant 0 : i32
      %c1_i32_98 = arith.constant 1 : i32
      %c0_i32_99 = arith.constant 0 : i32
      %154 = tpu.memref_slice %arg4[%153, %c0_i32_99] : memref<32x128xf32, #tpu.memory_space<any>> -> memref<1x128xf32, #tpu.memory_space<any>>
      %155 = tpu.memref_squeeze %154 : memref<1x128xf32, #tpu.memory_space<any>> -> memref<128xf32, #tpu.memory_space<any>>
      %c0_i32_100 = arith.constant 0 : i32
      %156 = tpu.memref_slice %arg9[%c0_i32_96, %c5_i32, %c0_i32_100] : memref<2x8x128xf32, #tpu.memory_space<vmem>> -> memref<1x1x128xf32, #tpu.memory_space<vmem>>
      %157 = tpu.memref_squeeze %156 : memref<1x1x128xf32, #tpu.memory_space<vmem>> -> memref<128xf32, #tpu.memory_space<vmem>>
      %158 = tpu.memref_slice %arg10[%c0_i32_97, %c1_i32_98] : memref<2x2x!tpu.dma_semaphore, #tpu.memory_space<semaphore_mem>> -> memref<1x1x!tpu.dma_semaphore, #tpu.memory_space<semaphore_mem>>
      %159 = tpu.memref_squeeze %158 : memref<1x1x!tpu.dma_semaphore, #tpu.memory_space<semaphore_mem>> -> memref<!tpu.dma_semaphore, #tpu.memory_space<semaphore_mem>>
      tpu.enqueue_dma source(%155 : memref<128xf32, #tpu.memory_space<any>>) target(%157 : memref<128xf32, #tpu.memory_space<vmem>>) target_semaphore(%159 : memref<!tpu.dma_semaphore, #tpu.memory_space<semaphore_mem>>)
      %c6_i32 = arith.constant 6 : i32
      %c0_i32_101 = arith.constant 0 : i32
      %160 = arith.addi %c0_i32_101, %c6_i32 : i32
      %161 = arith.index_cast %160 : i32 to index
      %162 = memref.load %arg1[%161] : memref<16xi32, #tpu.memory_space<smem>>
      %c0_i32_102 = arith.constant 0 : i32
      %c0_i32_103 = arith.constant 0 : i32
      %c0_i32_104 = arith.constant 0 : i32
      %c0_i32_105 = arith.constant 0 : i32
      %163 = tpu.memref_slice %arg3[%162, %c0_i32_105] : memref<64x128xf32, #tpu.memory_space<any>> -> memref<1x128xf32, #tpu.memory_space<any>>
      %164 = tpu.memref_squeeze %163 : memref<1x128xf32, #tpu.memory_space<any>> -> memref<128xf32, #tpu.memory_space<any>>
      %c0_i32_106 = arith.constant 0 : i32
      %165 = tpu.memref_slice %arg8[%c0_i32_102, %c6_i32, %c0_i32_106] : memref<2x8x128xf32, #tpu.memory_space<vmem>> -> memref<1x1x128xf32, #tpu.memory_space<vmem>>
      %166 = tpu.memref_squeeze %165 : memref<1x1x128xf32, #tpu.memory_space<vmem>> -> memref<128xf32, #tpu.memory_space<vmem>>
      %167 = tpu.memref_slice %arg10[%c0_i32_103, %c0_i32_104] : memref<2x2x!tpu.dma_semaphore, #tpu.memory_space<semaphore_mem>> -> memref<1x1x!tpu.dma_semaphore, #tpu.memory_space<semaphore_mem>>
      %168 = tpu.memref_squeeze %167 : memref<1x1x!tpu.dma_semaphore, #tpu.memory_space<semaphore_mem>> -> memref<!tpu.dma_semaphore, #tpu.memory_space<semaphore_mem>>
      tpu.enqueue_dma source(%164 : memref<128xf32, #tpu.memory_space<any>>) target(%166 : memref<128xf32, #tpu.memory_space<vmem>>) target_semaphore(%168 : memref<!tpu.dma_semaphore, #tpu.memory_space<semaphore_mem>>)
      %c0_i32_107 = arith.constant 0 : i32
      %169 = arith.addi %c0_i32_107, %c6_i32 : i32
      %170 = arith.index_cast %169 : i32 to index
      %171 = memref.load %arg2[%170] : memref<16xi32, #tpu.memory_space<smem>>
      %c0_i32_108 = arith.constant 0 : i32
      %c0_i32_109 = arith.constant 0 : i32
      %c1_i32_110 = arith.constant 1 : i32
      %c0_i32_111 = arith.constant 0 : i32
      %172 = tpu.memref_slice %arg4[%171, %c0_i32_111] : memref<32x128xf32, #tpu.memory_space<any>> -> memref<1x128xf32, #tpu.memory_space<any>>
      %173 = tpu.memref_squeeze %172 : memref<1x128xf32, #tpu.memory_space<any>> -> memref<128xf32, #tpu.memory_space<any>>
      %c0_i32_112 = arith.constant 0 : i32
      %174 = tpu.memref_slice %arg9[%c0_i32_108, %c6_i32, %c0_i32_112] : memref<2x8x128xf32, #tpu.memory_space<vmem>> -> memref<1x1x128xf32, #tpu.memory_space<vmem>>
      %175 = tpu.memref_squeeze %174 : memref<1x1x128xf32, #tpu.memory_space<vmem>> -> memref<128xf32, #tpu.memory_space<vmem>>
      %176 = tpu.memref_slice %arg10[%c0_i32_109, %c1_i32_110] : memref<2x2x!tpu.dma_semaphore, #tpu.memory_space<semaphore_mem>> -> memref<1x1x!tpu.dma_semaphore, #tpu.memory_space<semaphore_mem>>
      %177 = tpu.memref_squeeze %176 : memref<1x1x!tpu.dma_semaphore, #tpu.memory_space<semaphore_mem>> -> memref<!tpu.dma_semaphore, #tpu.memory_space<semaphore_mem>>
      tpu.enqueue_dma source(%173 : memref<128xf32, #tpu.memory_space<any>>) target(%175 : memref<128xf32, #tpu.memory_space<vmem>>) target_semaphore(%177 : memref<!tpu.dma_semaphore, #tpu.memory_space<semaphore_mem>>)
      %c7_i32 = arith.constant 7 : i32
      %c0_i32_113 = arith.constant 0 : i32
      %178 = arith.addi %c0_i32_113, %c7_i32 : i32
      %179 = arith.index_cast %178 : i32 to index
      %180 = memref.load %arg1[%179] : memref<16xi32, #tpu.memory_space<smem>>
      %c0_i32_114 = arith.constant 0 : i32
      %c0_i32_115 = arith.constant 0 : i32
      %c0_i32_116 = arith.constant 0 : i32
      %c0_i32_117 = arith.constant 0 : i32
      %181 = tpu.memref_slice %arg3[%180, %c0_i32_117] : memref<64x128xf32, #tpu.memory_space<any>> -> memref<1x128xf32, #tpu.memory_space<any>>
      %182 = tpu.memref_squeeze %181 : memref<1x128xf32, #tpu.memory_space<any>> -> memref<128xf32, #tpu.memory_space<any>>
      %c0_i32_118 = arith.constant 0 : i32
      %183 = tpu.memref_slice %arg8[%c0_i32_114, %c7_i32, %c0_i32_118] : memref<2x8x128xf32, #tpu.memory_space<vmem>> -> memref<1x1x128xf32, #tpu.memory_space<vmem>>
      %184 = tpu.memref_squeeze %183 : memref<1x1x128xf32, #tpu.memory_space<vmem>> -> memref<128xf32, #tpu.memory_space<vmem>>
      %185 = tpu.memref_slice %arg10[%c0_i32_115, %c0_i32_116] : memref<2x2x!tpu.dma_semaphore, #tpu.memory_space<semaphore_mem>> -> memref<1x1x!tpu.dma_semaphore, #tpu.memory_space<semaphore_mem>>
      %186 = tpu.memref_squeeze %185 : memref<1x1x!tpu.dma_semaphore, #tpu.memory_space<semaphore_mem>> -> memref<!tpu.dma_semaphore, #tpu.memory_space<semaphore_mem>>
      tpu.enqueue_dma source(%182 : memref<128xf32, #tpu.memory_space<any>>) target(%184 : memref<128xf32, #tpu.memory_space<vmem>>) target_semaphore(%186 : memref<!tpu.dma_semaphore, #tpu.memory_space<semaphore_mem>>)
      %c0_i32_119 = arith.constant 0 : i32
      %187 = arith.addi %c0_i32_119, %c7_i32 : i32
      %188 = arith.index_cast %187 : i32 to index
      %189 = memref.load %arg2[%188] : memref<16xi32, #tpu.memory_space<smem>>
      %c0_i32_120 = arith.constant 0 : i32
      %c0_i32_121 = arith.constant 0 : i32
      %c1_i32_122 = arith.constant 1 : i32
      %c0_i32_123 = arith.constant 0 : i32
      %190 = tpu.memref_slice %arg4[%189, %c0_i32_123] : memref<32x128xf32, #tpu.memory_space<any>> -> memref<1x128xf32, #tpu.memory_space<any>>
      %191 = tpu.memref_squeeze %190 : memref<1x128xf32, #tpu.memory_space<any>> -> memref<128xf32, #tpu.memory_space<any>>
      %c0_i32_124 = arith.constant 0 : i32
      %192 = tpu.memref_slice %arg9[%c0_i32_120, %c7_i32, %c0_i32_124] : memref<2x8x128xf32, #tpu.memory_space<vmem>> -> memref<1x1x128xf32, #tpu.memory_space<vmem>>
      %193 = tpu.memref_squeeze %192 : memref<1x1x128xf32, #tpu.memory_space<vmem>> -> memref<128xf32, #tpu.memory_space<vmem>>
      %194 = tpu.memref_slice %arg10[%c0_i32_121, %c1_i32_122] : memref<2x2x!tpu.dma_semaphore, #tpu.memory_space<semaphore_mem>> -> memref<1x1x!tpu.dma_semaphore, #tpu.memory_space<semaphore_mem>>
      %195 = tpu.memref_squeeze %194 : memref<1x1x!tpu.dma_semaphore, #tpu.memory_space<semaphore_mem>> -> memref<!tpu.dma_semaphore, #tpu.memory_space<semaphore_mem>>
      tpu.enqueue_dma source(%191 : memref<128xf32, #tpu.memory_space<any>>) target(%193 : memref<128xf32, #tpu.memory_space<vmem>>) target_semaphore(%195 : memref<!tpu.dma_semaphore, #tpu.memory_space<semaphore_mem>>)
      %c8_i32 = arith.constant 8 : i32
    } else {
    }
    %c1_i32 = arith.constant 1 : i32
    %3 = arith.addi %arg0, %c1_i32 : i32
    %c2_i32 = arith.constant 2 : i32
    %4 = arith.cmpi slt, %3, %c2_i32 : i32
    %5 = arith.extui %4 : i1 to i32
    %c0_i32_1 = arith.constant 0 : i32
    %6 = arith.cmpi ne, %5, %c0_i32_1 : i32
    scf.if %6 {
      %c1_i32_26 = arith.constant 1 : i32
      %52 = arith.addi %arg0, %c1_i32_26 : i32
      %c1_i32_27 = arith.constant 1 : i32
      %53 = arith.addi %arg0, %c1_i32_27 : i32
      %c1_i32_28 = arith.constant 1 : i32
      %54 = arith.andi %53, %c1_i32_28 : i32
      %c8_i32 = arith.constant 8 : i32
      %55 = arith.muli %52, %c8_i32 : i32
      %c0_i32_29 = arith.constant 0 : i32
      %56 = arith.addi %55, %c0_i32_29 : i32
      %57 = arith.index_cast %56 : i32 to index
      %58 = memref.load %arg1[%57] : memref<16xi32, #tpu.memory_space<smem>>
      %c0_i32_30 = arith.constant 0 : i32
      %c0_i32_31 = arith.constant 0 : i32
      %59 = tpu.memref_slice %arg3[%58, %c0_i32_31] : memref<64x128xf32, #tpu.memory_space<any>> -> memref<1x128xf32, #tpu.memory_space<any>>
      %60 = tpu.memref_squeeze %59 : memref<1x128xf32, #tpu.memory_space<any>> -> memref<128xf32, #tpu.memory_space<any>>
      %c0_i32_32 = arith.constant 0 : i32
      %61 = tpu.memref_slice %arg8[%54, %c0_i32_29, %c0_i32_32] : memref<2x8x128xf32, #tpu.memory_space<vmem>> -> memref<1x1x128xf32, #tpu.memory_space<vmem>>
      %62 = tpu.memref_squeeze %61 : memref<1x1x128xf32, #tpu.memory_space<vmem>> -> memref<128xf32, #tpu.memory_space<vmem>>
      %63 = tpu.memref_slice %arg10[%54, %c0_i32_30] : memref<2x2x!tpu.dma_semaphore, #tpu.memory_space<semaphore_mem>> -> memref<1x1x!tpu.dma_semaphore, #tpu.memory_space<semaphore_mem>>
      %64 = tpu.memref_squeeze %63 : memref<1x1x!tpu.dma_semaphore, #tpu.memory_space<semaphore_mem>> -> memref<!tpu.dma_semaphore, #tpu.memory_space<semaphore_mem>>
      tpu.enqueue_dma source(%60 : memref<128xf32, #tpu.memory_space<any>>) target(%62 : memref<128xf32, #tpu.memory_space<vmem>>) target_semaphore(%64 : memref<!tpu.dma_semaphore, #tpu.memory_space<semaphore_mem>>)
      %65 = arith.addi %55, %c0_i32_29 : i32
      %66 = arith.index_cast %65 : i32 to index
      %67 = memref.load %arg2[%66] : memref<16xi32, #tpu.memory_space<smem>>
      %c1_i32_33 = arith.constant 1 : i32
      %c0_i32_34 = arith.constant 0 : i32
      %68 = tpu.memref_slice %arg4[%67, %c0_i32_34] : memref<32x128xf32, #tpu.memory_space<any>> -> memref<1x128xf32, #tpu.memory_space<any>>
      %69 = tpu.memref_squeeze %68 : memref<1x128xf32, #tpu.memory_space<any>> -> memref<128xf32, #tpu.memory_space<any>>
      %c0_i32_35 = arith.constant 0 : i32
      %70 = tpu.memref_slice %arg9[%54, %c0_i32_29, %c0_i32_35] : memref<2x8x128xf32, #tpu.memory_space<vmem>> -> memref<1x1x128xf32, #tpu.memory_space<vmem>>
      %71 = tpu.memref_squeeze %70 : memref<1x1x128xf32, #tpu.memory_space<vmem>> -> memref<128xf32, #tpu.memory_space<vmem>>
      %72 = tpu.memref_slice %arg10[%54, %c1_i32_33] : memref<2x2x!tpu.dma_semaphore, #tpu.memory_space<semaphore_mem>> -> memref<1x1x!tpu.dma_semaphore, #tpu.memory_space<semaphore_mem>>
      %73 = tpu.memref_squeeze %72 : memref<1x1x!tpu.dma_semaphore, #tpu.memory_space<semaphore_mem>> -> memref<!tpu.dma_semaphore, #tpu.memory_space<semaphore_mem>>
      tpu.enqueue_dma source(%69 : memref<128xf32, #tpu.memory_space<any>>) target(%71 : memref<128xf32, #tpu.memory_space<vmem>>) target_semaphore(%73 : memref<!tpu.dma_semaphore, #tpu.memory_space<semaphore_mem>>)
      %c1_i32_36 = arith.constant 1 : i32
      %74 = arith.addi %55, %c1_i32_36 : i32
      %75 = arith.index_cast %74 : i32 to index
      %76 = memref.load %arg1[%75] : memref<16xi32, #tpu.memory_space<smem>>
      %c0_i32_37 = arith.constant 0 : i32
      %c0_i32_38 = arith.constant 0 : i32
      %77 = tpu.memref_slice %arg3[%76, %c0_i32_38] : memref<64x128xf32, #tpu.memory_space<any>> -> memref<1x128xf32, #tpu.memory_space<any>>
      %78 = tpu.memref_squeeze %77 : memref<1x128xf32, #tpu.memory_space<any>> -> memref<128xf32, #tpu.memory_space<any>>
      %c0_i32_39 = arith.constant 0 : i32
      %79 = tpu.memref_slice %arg8[%54, %c1_i32_36, %c0_i32_39] : memref<2x8x128xf32, #tpu.memory_space<vmem>> -> memref<1x1x128xf32, #tpu.memory_space<vmem>>
      %80 = tpu.memref_squeeze %79 : memref<1x1x128xf32, #tpu.memory_space<vmem>> -> memref<128xf32, #tpu.memory_space<vmem>>
      %81 = tpu.memref_slice %arg10[%54, %c0_i32_37] : memref<2x2x!tpu.dma_semaphore, #tpu.memory_space<semaphore_mem>> -> memref<1x1x!tpu.dma_semaphore, #tpu.memory_space<semaphore_mem>>
      %82 = tpu.memref_squeeze %81 : memref<1x1x!tpu.dma_semaphore, #tpu.memory_space<semaphore_mem>> -> memref<!tpu.dma_semaphore, #tpu.memory_space<semaphore_mem>>
      tpu.enqueue_dma source(%78 : memref<128xf32, #tpu.memory_space<any>>) target(%80 : memref<128xf32, #tpu.memory_space<vmem>>) target_semaphore(%82 : memref<!tpu.dma_semaphore, #tpu.memory_space<semaphore_mem>>)
      %83 = arith.addi %55, %c1_i32_36 : i32
      %84 = arith.index_cast %83 : i32 to index
      %85 = memref.load %arg2[%84] : memref<16xi32, #tpu.memory_space<smem>>
      %c1_i32_40 = arith.constant 1 : i32
      %c0_i32_41 = arith.constant 0 : i32
      %86 = tpu.memref_slice %arg4[%85, %c0_i32_41] : memref<32x128xf32, #tpu.memory_space<any>> -> memref<1x128xf32, #tpu.memory_space<any>>
      %87 = tpu.memref_squeeze %86 : memref<1x128xf32, #tpu.memory_space<any>> -> memref<128xf32, #tpu.memory_space<any>>
      %c0_i32_42 = arith.constant 0 : i32
      %88 = tpu.memref_slice %arg9[%54, %c1_i32_36, %c0_i32_42] : memref<2x8x128xf32, #tpu.memory_space<vmem>> -> memref<1x1x128xf32, #tpu.memory_space<vmem>>
      %89 = tpu.memref_squeeze %88 : memref<1x1x128xf32, #tpu.memory_space<vmem>> -> memref<128xf32, #tpu.memory_space<vmem>>
      %90 = tpu.memref_slice %arg10[%54, %c1_i32_40] : memref<2x2x!tpu.dma_semaphore, #tpu.memory_space<semaphore_mem>> -> memref<1x1x!tpu.dma_semaphore, #tpu.memory_space<semaphore_mem>>
      %91 = tpu.memref_squeeze %90 : memref<1x1x!tpu.dma_semaphore, #tpu.memory_space<semaphore_mem>> -> memref<!tpu.dma_semaphore, #tpu.memory_space<semaphore_mem>>
      tpu.enqueue_dma source(%87 : memref<128xf32, #tpu.memory_space<any>>) target(%89 : memref<128xf32, #tpu.memory_space<vmem>>) target_semaphore(%91 : memref<!tpu.dma_semaphore, #tpu.memory_space<semaphore_mem>>)
      %c2_i32_43 = arith.constant 2 : i32
      %92 = arith.addi %55, %c2_i32_43 : i32
      %93 = arith.index_cast %92 : i32 to index
      %94 = memref.load %arg1[%93] : memref<16xi32, #tpu.memory_space<smem>>
      %c0_i32_44 = arith.constant 0 : i32
      %c0_i32_45 = arith.constant 0 : i32
      %95 = tpu.memref_slice %arg3[%94, %c0_i32_45] : memref<64x128xf32, #tpu.memory_space<any>> -> memref<1x128xf32, #tpu.memory_space<any>>
      %96 = tpu.memref_squeeze %95 : memref<1x128xf32, #tpu.memory_space<any>> -> memref<128xf32, #tpu.memory_space<any>>
      %c0_i32_46 = arith.constant 0 : i32
      %97 = tpu.memref_slice %arg8[%54, %c2_i32_43, %c0_i32_46] : memref<2x8x128xf32, #tpu.memory_space<vmem>> -> memref<1x1x128xf32, #tpu.memory_space<vmem>>
      %98 = tpu.memref_squeeze %97 : memref<1x1x128xf32, #tpu.memory_space<vmem>> -> memref<128xf32, #tpu.memory_space<vmem>>
      %99 = tpu.memref_slice %arg10[%54, %c0_i32_44] : memref<2x2x!tpu.dma_semaphore, #tpu.memory_space<semaphore_mem>> -> memref<1x1x!tpu.dma_semaphore, #tpu.memory_space<semaphore_mem>>
      %100 = tpu.memref_squeeze %99 : memref<1x1x!tpu.dma_semaphore, #tpu.memory_space<semaphore_mem>> -> memref<!tpu.dma_semaphore, #tpu.memory_space<semaphore_mem>>
      tpu.enqueue_dma source(%96 : memref<128xf32, #tpu.memory_space<any>>) target(%98 : memref<128xf32, #tpu.memory_space<vmem>>) target_semaphore(%100 : memref<!tpu.dma_semaphore, #tpu.memory_space<semaphore_mem>>)
      %101 = arith.addi %55, %c2_i32_43 : i32
      %102 = arith.index_cast %101 : i32 to index
      %103 = memref.load %arg2[%102] : memref<16xi32, #tpu.memory_space<smem>>
      %c1_i32_47 = arith.constant 1 : i32
      %c0_i32_48 = arith.constant 0 : i32
      %104 = tpu.memref_slice %arg4[%103, %c0_i32_48] : memref<32x128xf32, #tpu.memory_space<any>> -> memref<1x128xf32, #tpu.memory_space<any>>
      %105 = tpu.memref_squeeze %104 : memref<1x128xf32, #tpu.memory_space<any>> -> memref<128xf32, #tpu.memory_space<any>>
      %c0_i32_49 = arith.constant 0 : i32
      %106 = tpu.memref_slice %arg9[%54, %c2_i32_43, %c0_i32_49] : memref<2x8x128xf32, #tpu.memory_space<vmem>> -> memref<1x1x128xf32, #tpu.memory_space<vmem>>
      %107 = tpu.memref_squeeze %106 : memref<1x1x128xf32, #tpu.memory_space<vmem>> -> memref<128xf32, #tpu.memory_space<vmem>>
      %108 = tpu.memref_slice %arg10[%54, %c1_i32_47] : memref<2x2x!tpu.dma_semaphore, #tpu.memory_space<semaphore_mem>> -> memref<1x1x!tpu.dma_semaphore, #tpu.memory_space<semaphore_mem>>
      %109 = tpu.memref_squeeze %108 : memref<1x1x!tpu.dma_semaphore, #tpu.memory_space<semaphore_mem>> -> memref<!tpu.dma_semaphore, #tpu.memory_space<semaphore_mem>>
      tpu.enqueue_dma source(%105 : memref<128xf32, #tpu.memory_space<any>>) target(%107 : memref<128xf32, #tpu.memory_space<vmem>>) target_semaphore(%109 : memref<!tpu.dma_semaphore, #tpu.memory_space<semaphore_mem>>)
      %c3_i32 = arith.constant 3 : i32
      %110 = arith.addi %55, %c3_i32 : i32
      %111 = arith.index_cast %110 : i32 to index
      %112 = memref.load %arg1[%111] : memref<16xi32, #tpu.memory_space<smem>>
      %c0_i32_50 = arith.constant 0 : i32
      %c0_i32_51 = arith.constant 0 : i32
      %113 = tpu.memref_slice %arg3[%112, %c0_i32_51] : memref<64x128xf32, #tpu.memory_space<any>> -> memref<1x128xf32, #tpu.memory_space<any>>
      %114 = tpu.memref_squeeze %113 : memref<1x128xf32, #tpu.memory_space<any>> -> memref<128xf32, #tpu.memory_space<any>>
      %c0_i32_52 = arith.constant 0 : i32
      %115 = tpu.memref_slice %arg8[%54, %c3_i32, %c0_i32_52] : memref<2x8x128xf32, #tpu.memory_space<vmem>> -> memref<1x1x128xf32, #tpu.memory_space<vmem>>
      %116 = tpu.memref_squeeze %115 : memref<1x1x128xf32, #tpu.memory_space<vmem>> -> memref<128xf32, #tpu.memory_space<vmem>>
      %117 = tpu.memref_slice %arg10[%54, %c0_i32_50] : memref<2x2x!tpu.dma_semaphore, #tpu.memory_space<semaphore_mem>> -> memref<1x1x!tpu.dma_semaphore, #tpu.memory_space<semaphore_mem>>
      %118 = tpu.memref_squeeze %117 : memref<1x1x!tpu.dma_semaphore, #tpu.memory_space<semaphore_mem>> -> memref<!tpu.dma_semaphore, #tpu.memory_space<semaphore_mem>>
      tpu.enqueue_dma source(%114 : memref<128xf32, #tpu.memory_space<any>>) target(%116 : memref<128xf32, #tpu.memory_space<vmem>>) target_semaphore(%118 : memref<!tpu.dma_semaphore, #tpu.memory_space<semaphore_mem>>)
      %119 = arith.addi %55, %c3_i32 : i32
      %120 = arith.index_cast %119 : i32 to index
      %121 = memref.load %arg2[%120] : memref<16xi32, #tpu.memory_space<smem>>
      %c1_i32_53 = arith.constant 1 : i32
      %c0_i32_54 = arith.constant 0 : i32
      %122 = tpu.memref_slice %arg4[%121, %c0_i32_54] : memref<32x128xf32, #tpu.memory_space<any>> -> memref<1x128xf32, #tpu.memory_space<any>>
      %123 = tpu.memref_squeeze %122 : memref<1x128xf32, #tpu.memory_space<any>> -> memref<128xf32, #tpu.memory_space<any>>
      %c0_i32_55 = arith.constant 0 : i32
      %124 = tpu.memref_slice %arg9[%54, %c3_i32, %c0_i32_55] : memref<2x8x128xf32, #tpu.memory_space<vmem>> -> memref<1x1x128xf32, #tpu.memory_space<vmem>>
      %125 = tpu.memref_squeeze %124 : memref<1x1x128xf32, #tpu.memory_space<vmem>> -> memref<128xf32, #tpu.memory_space<vmem>>
      %126 = tpu.memref_slice %arg10[%54, %c1_i32_53] : memref<2x2x!tpu.dma_semaphore, #tpu.memory_space<semaphore_mem>> -> memref<1x1x!tpu.dma_semaphore, #tpu.memory_space<semaphore_mem>>
      %127 = tpu.memref_squeeze %126 : memref<1x1x!tpu.dma_semaphore, #tpu.memory_space<semaphore_mem>> -> memref<!tpu.dma_semaphore, #tpu.memory_space<semaphore_mem>>
      tpu.enqueue_dma source(%123 : memref<128xf32, #tpu.memory_space<any>>) target(%125 : memref<128xf32, #tpu.memory_space<vmem>>) target_semaphore(%127 : memref<!tpu.dma_semaphore, #tpu.memory_space<semaphore_mem>>)
      %c4_i32 = arith.constant 4 : i32
      %128 = arith.addi %55, %c4_i32 : i32
      %129 = arith.index_cast %128 : i32 to index
      %130 = memref.load %arg1[%129] : memref<16xi32, #tpu.memory_space<smem>>
      %c0_i32_56 = arith.constant 0 : i32
      %c0_i32_57 = arith.constant 0 : i32
      %131 = tpu.memref_slice %arg3[%130, %c0_i32_57] : memref<64x128xf32, #tpu.memory_space<any>> -> memref<1x128xf32, #tpu.memory_space<any>>
      %132 = tpu.memref_squeeze %131 : memref<1x128xf32, #tpu.memory_space<any>> -> memref<128xf32, #tpu.memory_space<any>>
      %c0_i32_58 = arith.constant 0 : i32
      %133 = tpu.memref_slice %arg8[%54, %c4_i32, %c0_i32_58] : memref<2x8x128xf32, #tpu.memory_space<vmem>> -> memref<1x1x128xf32, #tpu.memory_space<vmem>>
      %134 = tpu.memref_squeeze %133 : memref<1x1x128xf32, #tpu.memory_space<vmem>> -> memref<128xf32, #tpu.memory_space<vmem>>
      %135 = tpu.memref_slice %arg10[%54, %c0_i32_56] : memref<2x2x!tpu.dma_semaphore, #tpu.memory_space<semaphore_mem>> -> memref<1x1x!tpu.dma_semaphore, #tpu.memory_space<semaphore_mem>>
      %136 = tpu.memref_squeeze %135 : memref<1x1x!tpu.dma_semaphore, #tpu.memory_space<semaphore_mem>> -> memref<!tpu.dma_semaphore, #tpu.memory_space<semaphore_mem>>
      tpu.enqueue_dma source(%132 : memref<128xf32, #tpu.memory_space<any>>) target(%134 : memref<128xf32, #tpu.memory_space<vmem>>) target_semaphore(%136 : memref<!tpu.dma_semaphore, #tpu.memory_space<semaphore_mem>>)
      %137 = arith.addi %55, %c4_i32 : i32
      %138 = arith.index_cast %137 : i32 to index
      %139 = memref.load %arg2[%138] : memref<16xi32, #tpu.memory_space<smem>>
      %c1_i32_59 = arith.constant 1 : i32
      %c0_i32_60 = arith.constant 0 : i32
      %140 = tpu.memref_slice %arg4[%139, %c0_i32_60] : memref<32x128xf32, #tpu.memory_space<any>> -> memref<1x128xf32, #tpu.memory_space<any>>
      %141 = tpu.memref_squeeze %140 : memref<1x128xf32, #tpu.memory_space<any>> -> memref<128xf32, #tpu.memory_space<any>>
      %c0_i32_61 = arith.constant 0 : i32
      %142 = tpu.memref_slice %arg9[%54, %c4_i32, %c0_i32_61] : memref<2x8x128xf32, #tpu.memory_space<vmem>> -> memref<1x1x128xf32, #tpu.memory_space<vmem>>
      %143 = tpu.memref_squeeze %142 : memref<1x1x128xf32, #tpu.memory_space<vmem>> -> memref<128xf32, #tpu.memory_space<vmem>>
      %144 = tpu.memref_slice %arg10[%54, %c1_i32_59] : memref<2x2x!tpu.dma_semaphore, #tpu.memory_space<semaphore_mem>> -> memref<1x1x!tpu.dma_semaphore, #tpu.memory_space<semaphore_mem>>
      %145 = tpu.memref_squeeze %144 : memref<1x1x!tpu.dma_semaphore, #tpu.memory_space<semaphore_mem>> -> memref<!tpu.dma_semaphore, #tpu.memory_space<semaphore_mem>>
      tpu.enqueue_dma source(%141 : memref<128xf32, #tpu.memory_space<any>>) target(%143 : memref<128xf32, #tpu.memory_space<vmem>>) target_semaphore(%145 : memref<!tpu.dma_semaphore, #tpu.memory_space<semaphore_mem>>)
      %c5_i32 = arith.constant 5 : i32
      %146 = arith.addi %55, %c5_i32 : i32
      %147 = arith.index_cast %146 : i32 to index
      %148 = memref.load %arg1[%147] : memref<16xi32, #tpu.memory_space<smem>>
      %c0_i32_62 = arith.constant 0 : i32
      %c0_i32_63 = arith.constant 0 : i32
      %149 = tpu.memref_slice %arg3[%148, %c0_i32_63] : memref<64x128xf32, #tpu.memory_space<any>> -> memref<1x128xf32, #tpu.memory_space<any>>
      %150 = tpu.memref_squeeze %149 : memref<1x128xf32, #tpu.memory_space<any>> -> memref<128xf32, #tpu.memory_space<any>>
      %c0_i32_64 = arith.constant 0 : i32
      %151 = tpu.memref_slice %arg8[%54, %c5_i32, %c0_i32_64] : memref<2x8x128xf32, #tpu.memory_space<vmem>> -> memref<1x1x128xf32, #tpu.memory_space<vmem>>
      %152 = tpu.memref_squeeze %151 : memref<1x1x128xf32, #tpu.memory_space<vmem>> -> memref<128xf32, #tpu.memory_space<vmem>>
      %153 = tpu.memref_slice %arg10[%54, %c0_i32_62] : memref<2x2x!tpu.dma_semaphore, #tpu.memory_space<semaphore_mem>> -> memref<1x1x!tpu.dma_semaphore, #tpu.memory_space<semaphore_mem>>
      %154 = tpu.memref_squeeze %153 : memref<1x1x!tpu.dma_semaphore, #tpu.memory_space<semaphore_mem>> -> memref<!tpu.dma_semaphore, #tpu.memory_space<semaphore_mem>>
      tpu.enqueue_dma source(%150 : memref<128xf32, #tpu.memory_space<any>>) target(%152 : memref<128xf32, #tpu.memory_space<vmem>>) target_semaphore(%154 : memref<!tpu.dma_semaphore, #tpu.memory_space<semaphore_mem>>)
      %155 = arith.addi %55, %c5_i32 : i32
      %156 = arith.index_cast %155 : i32 to index
      %157 = memref.load %arg2[%156] : memref<16xi32, #tpu.memory_space<smem>>
      %c1_i32_65 = arith.constant 1 : i32
      %c0_i32_66 = arith.constant 0 : i32
      %158 = tpu.memref_slice %arg4[%157, %c0_i32_66] : memref<32x128xf32, #tpu.memory_space<any>> -> memref<1x128xf32, #tpu.memory_space<any>>
      %159 = tpu.memref_squeeze %158 : memref<1x128xf32, #tpu.memory_space<any>> -> memref<128xf32, #tpu.memory_space<any>>
      %c0_i32_67 = arith.constant 0 : i32
      %160 = tpu.memref_slice %arg9[%54, %c5_i32, %c0_i32_67] : memref<2x8x128xf32, #tpu.memory_space<vmem>> -> memref<1x1x128xf32, #tpu.memory_space<vmem>>
      %161 = tpu.memref_squeeze %160 : memref<1x1x128xf32, #tpu.memory_space<vmem>> -> memref<128xf32, #tpu.memory_space<vmem>>
      %162 = tpu.memref_slice %arg10[%54, %c1_i32_65] : memref<2x2x!tpu.dma_semaphore, #tpu.memory_space<semaphore_mem>> -> memref<1x1x!tpu.dma_semaphore, #tpu.memory_space<semaphore_mem>>
      %163 = tpu.memref_squeeze %162 : memref<1x1x!tpu.dma_semaphore, #tpu.memory_space<semaphore_mem>> -> memref<!tpu.dma_semaphore, #tpu.memory_space<semaphore_mem>>
      tpu.enqueue_dma source(%159 : memref<128xf32, #tpu.memory_space<any>>) target(%161 : memref<128xf32, #tpu.memory_space<vmem>>) target_semaphore(%163 : memref<!tpu.dma_semaphore, #tpu.memory_space<semaphore_mem>>)
      %c6_i32 = arith.constant 6 : i32
      %164 = arith.addi %55, %c6_i32 : i32
      %165 = arith.index_cast %164 : i32 to index
      %166 = memref.load %arg1[%165] : memref<16xi32, #tpu.memory_space<smem>>
      %c0_i32_68 = arith.constant 0 : i32
      %c0_i32_69 = arith.constant 0 : i32
      %167 = tpu.memref_slice %arg3[%166, %c0_i32_69] : memref<64x128xf32, #tpu.memory_space<any>> -> memref<1x128xf32, #tpu.memory_space<any>>
      %168 = tpu.memref_squeeze %167 : memref<1x128xf32, #tpu.memory_space<any>> -> memref<128xf32, #tpu.memory_space<any>>
      %c0_i32_70 = arith.constant 0 : i32
      %169 = tpu.memref_slice %arg8[%54, %c6_i32, %c0_i32_70] : memref<2x8x128xf32, #tpu.memory_space<vmem>> -> memref<1x1x128xf32, #tpu.memory_space<vmem>>
      %170 = tpu.memref_squeeze %169 : memref<1x1x128xf32, #tpu.memory_space<vmem>> -> memref<128xf32, #tpu.memory_space<vmem>>
      %171 = tpu.memref_slice %arg10[%54, %c0_i32_68] : memref<2x2x!tpu.dma_semaphore, #tpu.memory_space<semaphore_mem>> -> memref<1x1x!tpu.dma_semaphore, #tpu.memory_space<semaphore_mem>>
      %172 = tpu.memref_squeeze %171 : memref<1x1x!tpu.dma_semaphore, #tpu.memory_space<semaphore_mem>> -> memref<!tpu.dma_semaphore, #tpu.memory_space<semaphore_mem>>
      tpu.enqueue_dma source(%168 : memref<128xf32, #tpu.memory_space<any>>) target(%170 : memref<128xf32, #tpu.memory_space<vmem>>) target_semaphore(%172 : memref<!tpu.dma_semaphore, #tpu.memory_space<semaphore_mem>>)
      %173 = arith.addi %55, %c6_i32 : i32
      %174 = arith.index_cast %173 : i32 to index
      %175 = memref.load %arg2[%174] : memref<16xi32, #tpu.memory_space<smem>>
      %c1_i32_71 = arith.constant 1 : i32
      %c0_i32_72 = arith.constant 0 : i32
      %176 = tpu.memref_slice %arg4[%175, %c0_i32_72] : memref<32x128xf32, #tpu.memory_space<any>> -> memref<1x128xf32, #tpu.memory_space<any>>
      %177 = tpu.memref_squeeze %176 : memref<1x128xf32, #tpu.memory_space<any>> -> memref<128xf32, #tpu.memory_space<any>>
      %c0_i32_73 = arith.constant 0 : i32
      %178 = tpu.memref_slice %arg9[%54, %c6_i32, %c0_i32_73] : memref<2x8x128xf32, #tpu.memory_space<vmem>> -> memref<1x1x128xf32, #tpu.memory_space<vmem>>
      %179 = tpu.memref_squeeze %178 : memref<1x1x128xf32, #tpu.memory_space<vmem>> -> memref<128xf32, #tpu.memory_space<vmem>>
      %180 = tpu.memref_slice %arg10[%54, %c1_i32_71] : memref<2x2x!tpu.dma_semaphore, #tpu.memory_space<semaphore_mem>> -> memref<1x1x!tpu.dma_semaphore, #tpu.memory_space<semaphore_mem>>
      %181 = tpu.memref_squeeze %180 : memref<1x1x!tpu.dma_semaphore, #tpu.memory_space<semaphore_mem>> -> memref<!tpu.dma_semaphore, #tpu.memory_space<semaphore_mem>>
      tpu.enqueue_dma source(%177 : memref<128xf32, #tpu.memory_space<any>>) target(%179 : memref<128xf32, #tpu.memory_space<vmem>>) target_semaphore(%181 : memref<!tpu.dma_semaphore, #tpu.memory_space<semaphore_mem>>)
      %c7_i32 = arith.constant 7 : i32
      %182 = arith.addi %55, %c7_i32 : i32
      %183 = arith.index_cast %182 : i32 to index
      %184 = memref.load %arg1[%183] : memref<16xi32, #tpu.memory_space<smem>>
      %c0_i32_74 = arith.constant 0 : i32
      %c0_i32_75 = arith.constant 0 : i32
      %185 = tpu.memref_slice %arg3[%184, %c0_i32_75] : memref<64x128xf32, #tpu.memory_space<any>> -> memref<1x128xf32, #tpu.memory_space<any>>
      %186 = tpu.memref_squeeze %185 : memref<1x128xf32, #tpu.memory_space<any>> -> memref<128xf32, #tpu.memory_space<any>>
      %c0_i32_76 = arith.constant 0 : i32
      %187 = tpu.memref_slice %arg8[%54, %c7_i32, %c0_i32_76] : memref<2x8x128xf32, #tpu.memory_space<vmem>> -> memref<1x1x128xf32, #tpu.memory_space<vmem>>
      %188 = tpu.memref_squeeze %187 : memref<1x1x128xf32, #tpu.memory_space<vmem>> -> memref<128xf32, #tpu.memory_space<vmem>>
      %189 = tpu.memref_slice %arg10[%54, %c0_i32_74] : memref<2x2x!tpu.dma_semaphore, #tpu.memory_space<semaphore_mem>> -> memref<1x1x!tpu.dma_semaphore, #tpu.memory_space<semaphore_mem>>
      %190 = tpu.memref_squeeze %189 : memref<1x1x!tpu.dma_semaphore, #tpu.memory_space<semaphore_mem>> -> memref<!tpu.dma_semaphore, #tpu.memory_space<semaphore_mem>>
      tpu.enqueue_dma source(%186 : memref<128xf32, #tpu.memory_space<any>>) target(%188 : memref<128xf32, #tpu.memory_space<vmem>>) target_semaphore(%190 : memref<!tpu.dma_semaphore, #tpu.memory_space<semaphore_mem>>)
      %191 = arith.addi %55, %c7_i32 : i32
      %192 = arith.index_cast %191 : i32 to index
      %193 = memref.load %arg2[%192] : memref<16xi32, #tpu.memory_space<smem>>
      %c1_i32_77 = arith.constant 1 : i32
      %c0_i32_78 = arith.constant 0 : i32
      %194 = tpu.memref_slice %arg4[%193, %c0_i32_78] : memref<32x128xf32, #tpu.memory_space<any>> -> memref<1x128xf32, #tpu.memory_space<any>>
      %195 = tpu.memref_squeeze %194 : memref<1x128xf32, #tpu.memory_space<any>> -> memref<128xf32, #tpu.memory_space<any>>
      %c0_i32_79 = arith.constant 0 : i32
      %196 = tpu.memref_slice %arg9[%54, %c7_i32, %c0_i32_79] : memref<2x8x128xf32, #tpu.memory_space<vmem>> -> memref<1x1x128xf32, #tpu.memory_space<vmem>>
      %197 = tpu.memref_squeeze %196 : memref<1x1x128xf32, #tpu.memory_space<vmem>> -> memref<128xf32, #tpu.memory_space<vmem>>
      %198 = tpu.memref_slice %arg10[%54, %c1_i32_77] : memref<2x2x!tpu.dma_semaphore, #tpu.memory_space<semaphore_mem>> -> memref<1x1x!tpu.dma_semaphore, #tpu.memory_space<semaphore_mem>>
      %199 = tpu.memref_squeeze %198 : memref<1x1x!tpu.dma_semaphore, #tpu.memory_space<semaphore_mem>> -> memref<!tpu.dma_semaphore, #tpu.memory_space<semaphore_mem>>
      tpu.enqueue_dma source(%195 : memref<128xf32, #tpu.memory_space<any>>) target(%197 : memref<128xf32, #tpu.memory_space<vmem>>) target_semaphore(%199 : memref<!tpu.dma_semaphore, #tpu.memory_space<semaphore_mem>>)
      %c8_i32_80 = arith.constant 8 : i32
    } else {
    }
    %c1_i32_2 = arith.constant 1 : i32
    %7 = arith.andi %arg0, %c1_i32_2 : i32
    %c0_i32_3 = arith.constant 0 : i32
    %c0_i32_4 = arith.constant 0 : i32
    %c0_i32_5 = arith.constant 0 : i32
    %8 = tpu.memref_slice %arg8[%7, %c0_i32_4, %c0_i32_5] : memref<2x8x128xf32, #tpu.memory_space<vmem>> -> memref<1x8x128xf32, #tpu.memory_space<vmem>>
    %9 = tpu.memref_squeeze %8 : memref<1x8x128xf32, #tpu.memory_space<vmem>> -> memref<8x128xf32, #tpu.memory_space<vmem>>
    %c0_i32_6 = arith.constant 0 : i32
    %c0_i32_7 = arith.constant 0 : i32
    %10 = tpu.memref_slice %arg8[%7, %c0_i32_6, %c0_i32_7] : memref<2x8x128xf32, #tpu.memory_space<vmem>> -> memref<1x8x128xf32, #tpu.memory_space<vmem>>
    %11 = tpu.memref_squeeze %10 : memref<1x8x128xf32, #tpu.memory_space<vmem>> -> memref<8x128xf32, #tpu.memory_space<vmem>>
    %12 = tpu.memref_slice %arg10[%7, %c0_i32_3] : memref<2x2x!tpu.dma_semaphore, #tpu.memory_space<semaphore_mem>> -> memref<1x1x!tpu.dma_semaphore, #tpu.memory_space<semaphore_mem>>
    %13 = tpu.memref_squeeze %12 : memref<1x1x!tpu.dma_semaphore, #tpu.memory_space<semaphore_mem>> -> memref<!tpu.dma_semaphore, #tpu.memory_space<semaphore_mem>>
    tpu.wait_dma2 semaphore(%13 : memref<!tpu.dma_semaphore, #tpu.memory_space<semaphore_mem>>) src(%9 : memref<8x128xf32, #tpu.memory_space<vmem>>) dst(%11 : memref<8x128xf32, #tpu.memory_space<vmem>>)
    %c1_i32_8 = arith.constant 1 : i32
    %c0_i32_9 = arith.constant 0 : i32
    %c0_i32_10 = arith.constant 0 : i32
    %14 = tpu.memref_slice %arg9[%7, %c0_i32_9, %c0_i32_10] : memref<2x8x128xf32, #tpu.memory_space<vmem>> -> memref<1x8x128xf32, #tpu.memory_space<vmem>>
    %15 = tpu.memref_squeeze %14 : memref<1x8x128xf32, #tpu.memory_space<vmem>> -> memref<8x128xf32, #tpu.memory_space<vmem>>
    %c0_i32_11 = arith.constant 0 : i32
    %c0_i32_12 = arith.constant 0 : i32
    %16 = tpu.memref_slice %arg9[%7, %c0_i32_11, %c0_i32_12] : memref<2x8x128xf32, #tpu.memory_space<vmem>> -> memref<1x8x128xf32, #tpu.memory_space<vmem>>
    %17 = tpu.memref_squeeze %16 : memref<1x8x128xf32, #tpu.memory_space<vmem>> -> memref<8x128xf32, #tpu.memory_space<vmem>>
    %18 = tpu.memref_slice %arg10[%7, %c1_i32_8] : memref<2x2x!tpu.dma_semaphore, #tpu.memory_space<semaphore_mem>> -> memref<1x1x!tpu.dma_semaphore, #tpu.memory_space<semaphore_mem>>
    %19 = tpu.memref_squeeze %18 : memref<1x1x!tpu.dma_semaphore, #tpu.memory_space<semaphore_mem>> -> memref<!tpu.dma_semaphore, #tpu.memory_space<semaphore_mem>>
    tpu.wait_dma2 semaphore(%19 : memref<!tpu.dma_semaphore, #tpu.memory_space<semaphore_mem>>) src(%15 : memref<8x128xf32, #tpu.memory_space<vmem>>) dst(%17 : memref<8x128xf32, #tpu.memory_space<vmem>>)
    %20 = arith.index_cast %7 : i32 to index
    %c0 = arith.constant 0 : index
    %c0_13 = arith.constant 0 : index
    %21 = vector.load %arg8[%20, %c0, %c0_13] : memref<2x8x128xf32, #tpu.memory_space<vmem>>, vector<1x8x128xf32>
    %22 = vector.shape_cast %21 : vector<1x8x128xf32> to vector<8x128xf32>
    %23 = arith.index_cast %7 : i32 to index
    %c0_14 = arith.constant 0 : index
    %c0_15 = arith.constant 0 : index
    %24 = vector.load %arg9[%23, %c0_14, %c0_15] : memref<2x8x128xf32, #tpu.memory_space<vmem>>, vector<1x8x128xf32>
    %25 = vector.shape_cast %24 : vector<1x8x128xf32> to vector<8x128xf32>
    %26 = arith.addf %22, %25 : vector<8x128xf32>
    %cst = arith.constant dense<0.000000e+00> : vector<8xf32>
    %27 = vector.multi_reduction <add>, %26, %cst [1] : vector<8x128xf32> to vector<8xf32>
    %28 = vector.shape_cast %27 : vector<8xf32> to vector<8x1xf32>
    %cst_16 = arith.constant 7.812500e-03 : f32
    %29 = vector.broadcast %cst_16 : f32 to vector<8x1xf32>
    %30 = arith.mulf %28, %29 : vector<8x1xf32>
    %31 = arith.mulf %26, %26 : vector<8x128xf32>
    %cst_17 = arith.constant dense<0.000000e+00> : vector<8xf32>
    %32 = vector.multi_reduction <add>, %31, %cst_17 [1] : vector<8x128xf32> to vector<8xf32>
    %33 = vector.shape_cast %32 : vector<8xf32> to vector<8x1xf32>
    %cst_18 = arith.constant 7.812500e-03 : f32
    %34 = vector.broadcast %cst_18 : f32 to vector<8x1xf32>
    %35 = arith.mulf %33, %34 : vector<8x1xf32>
    %36 = arith.mulf %30, %30 : vector<8x1xf32>
    %37 = arith.subf %35, %36 : vector<8x1xf32>
    %cst_19 = arith.constant 9.99999996E-13 : f32
    %38 = vector.broadcast %cst_19 : f32 to vector<8x1xf32>
    %39 = arith.addf %37, %38 : vector<8x1xf32>
    %40 = math.rsqrt %39 : vector<8x1xf32>
    %41 = vector.broadcast %30 : vector<8x1xf32> to vector<8x128xf32>
    %42 = arith.subf %26, %41 : vector<8x128xf32>
    %43 = vector.broadcast %40 : vector<8x1xf32> to vector<8x128xf32>
    %44 = arith.mulf %42, %43 : vector<8x128xf32>
    %c0_20 = arith.constant 0 : index
    %c0_21 = arith.constant 0 : index
    %45 = vector.load %arg5[%c0_20, %c0_21] : memref<1x128xf32, #tpu.memory_space<vmem>>, vector<1x128xf32>
    %46 = vector.broadcast %45 : vector<1x128xf32> to vector<8x128xf32>
    %47 = arith.mulf %44, %46 : vector<8x128xf32>
    %c0_22 = arith.constant 0 : index
    %c0_23 = arith.constant 0 : index
    %48 = vector.load %arg6[%c0_22, %c0_23] : memref<1x128xf32, #tpu.memory_space<vmem>>, vector<1x128xf32>
    %49 = vector.broadcast %48 : vector<1x128xf32> to vector<8x128xf32>
    %50 = arith.addf %47, %49 : vector<8x128xf32>
    %c0_24 = arith.constant 0 : index
    %c0_25 = arith.constant 0 : index
    %51 = vector.load %arg7[%c0_24, %c0_25] : memref<8x128xf32, #tpu.memory_space<vmem>>, vector<8x128xf32>
    tpu.vector_store %arg7[%c0_24, %c0_25], %50 {strides = array<i32>} : memref<8x128xf32, #tpu.memory_space<vmem>>, vector<8x128xf32>,
    return
  }
  func.func @transform_2(%arg0: i32, %arg1: memref<16xi32, #tpu.memory_space<smem>>, %arg2: memref<16xi32, #tpu.memory_space<smem>>) -> (i32, i32) {
    %c0_i32 = arith.constant 0 : i32
    %c0_i32_0 = arith.constant 0 : i32
    %c0_i32_1 = arith.constant 0 : i32
    return %c0_i32, %c0_i32_0 : i32, i32
  }
  func.func @transform_3(%arg0: i32, %arg1: memref<16xi32, #tpu.memory_space<smem>>, %arg2: memref<16xi32, #tpu.memory_space<smem>>) -> (i32, i32) {
    %c0_i32 = arith.constant 0 : i32
    %c0_i32_0 = arith.constant 0 : i32
    %c0_i32_1 = arith.constant 0 : i32
    return %c0_i32, %c0_i32_0 : i32, i32
  }
  func.func @transform_4(%arg0: i32, %arg1: memref<16xi32, #tpu.memory_space<smem>>, %arg2: memref<16xi32, #tpu.memory_space<smem>>) -> (i32, i32) {
    %c0_i32 = arith.constant 0 : i32
    %c0_i32_0 = arith.constant 0 : i32
    return %arg0, %c0_i32 : i32, i32
  }
}

</mosaic_0001>

<bundles_post_ra>
// kernel: tpu_custom_call.1
= control target key start
LH: loop header
LB: loop body
LE: loop exit
PB: predicated region body
PF: predicated region fallthrough
CT: control target
= control target key end

     0   :  { %s2033_s21 = smov [#allocation6]   ;;  %s3027_s0 = inlined_call_operand.hbm [shape: s32[16], index: 0, kind: input, shape index: {}]   ;;  %s3028_s2 = inlined_call_operand.hbm [shape: f32[64,128], index: 2, kind: input, shape index: {}]   ;;  %s3029_s3 = inlined_call_operand.hbm [shape: f32[32,128], index: 3, kind: input, shape index: {}]   ;;  %s3030_s4 = inlined_call_operand.vmem [shape: f32[1,128], index: 4, kind: input, shape index: {}]   ;;  %s3031_s5 = inlined_call_operand.vmem [shape: f32[1,128], index: 5, kind: input, shape index: {}]   ;;  %s3032_s6 = inlined_call_operand.hbm [shape: f32[16,128], index: 6, kind: output, shape index: {}]   ;;  %s3033_s1 = inlined_call_operand.vmem [shape: s32[16], index: 1, kind: input, shape index: {}]  }
   0x1   :  { %3051 = sst [smem:[#allocation108_spill]] %s3030_s4  ;;  %s13_s26 = sshll.u32 %s3033_s1, 4  ;;  %s14_s26 = int_to_ptr.vmem [resolvable:$true] %s13_s26 }
   0x2   :  { %3052 = sst [smem:[#allocation109_spill]] %s3031_s5  ;;  %s1121_s27 = scalar_lea.vmem %s14_s26, 16 }
   0x3   :  { %3053 = sst [smem:[#allocation110_spill]] %s3032_s6  ;;  %p1122_p0 = scmp.ne.s32.totalorder %s14_s26, %s1121_s27 }
   0x4   :  { %12 = dma.hbm_to_smem %s3027_s0, 16, %s2033_s21, [#allocation5] }
   0x5   :  { %p1126_p1 = scmp.lt.s32.totalorder %s14_s26, %s14_s26  ;;  %p1127_p2 = scmp.lt.s32.totalorder %s1121_s27, %s1121_s27 }
   0x7   :  { %p1128_p3 = por %p1127_p2, %p1126_p1 }
   0x9   :  { %p1129_p4 = pnand %p1128_p3, %p1122_p0 }
   0xb   :  { %1132 = shalt.err (!%p1129_p4)  }
   0xc   :  { %s2034_s28 = smov [#allocation7]  }
   0xd   :  { %16 = dma.vmem_to_smem %s14_s26, 16, %s2034_s28, [#allocation5] }
   0xe   :  { %2007 = dma.done.wait [#allocation5], 32 }
   0xf   :  { %2008 = vsyncadd [#allocation5], 4294967264 }
  0x10   :  { %18 = sfence }
  0x11   :  { %19 = vsyncpa [#allocation9], 0 }
  0x12   :  { %21 = vsyncpa [#allocation9 + $0x1], 0  ;;  %s2093_s0 = smov 0   ;;  %s2095_s29 = smov 0  }
  0x13   :  { %s2097_s1 = smov 0   ;;  %s2099_s30 = smov 0  }
  0x14 LB: > { %3054 = sst [smem:[#allocation96_spill]] %s2019_s0  ;;  %s2114_s7 = sadd.s32 4294967295, %s2031_s30   ;;  %s2031_s30 = sphi %s2099_s30, %s3084_s30   ;;  %s2027_s1 = sphi %s2097_s1, %s3087_s1   ;;  %s2023_s29 = sphi %s2095_s29, %s3086_s29   ;;  %s2019_s0 = sphi %s2093_s0, %s3085_s0  }
  0x15   : > { %3055 = sst [smem:[#allocation97_spill]] %s2023_s29  ;;  %s901_s8 = sadd.s32 4294967294, %s2031_s30  }
  0x16   : > { %3056 = sst [smem:[#allocation98_spill]] %s2027_s1  ;;  %s2118_s9 = sadd.s32 1, %s2031_s30  }
  0x17   : > { %3057 = sst [smem:[#allocation99_spill]] %s2031_s30  ;;  %s76_s10 = sadd.s32 1, %s2027_s1 }
  0x18   : > { %3058 = sst [smem:[#allocation100_spill]] %s2114_s7  ;;  %s73_s11 = ssub.s32 %s2031_s30, %s2118_s9 }
  0x19   : > { %3059 = sst [smem:[#allocation101_spill]] %s2118_s9  ;;  %p86_p5 = scmp.ne.s32.totalorder %s2027_s1, %s2023_s29 }
  0x1a   : > { %p74_p6 = scmp.eq.s32.totalorder %s73_s11, 0  ;;  %p87_p7 = scmp.eq.s32.totalorder %s2114_s7, 1 }
  0x1b   : > { %p92_p8 = scmp.ne.s32.totalorder %s2023_s29, %s2019_s0  ;;  %p93_p9 = scmp.eq.s32.totalorder %s901_s8, 1 }
  0x1c   : > { %s2129_s12 = scalar_select %p74_p6, %s2027_s1, %s76_s10  }
  0x1d   : > { %p2131_p10 = por %p87_p7, %p86_p5  ;;  %p2135_p11 = por %p93_p9, %p92_p8 }
  0x1e   : > { %3060 = sst [smem:[#allocation102_spill]] %s2129_s12  ;;  %p903_p12 = scmp.ge.s32.totalorder %s2031_s30, 1 }
  0x1f   : > { %s3061_s13 = scalar_select %p2131_p10, 1, 0 }
  0x20   : > { %s3063_s14 = scalar_select %p2135_p11, 1, 0 }
  0x21   : > { %3062 = sst [smem:[#allocation103_spill]] %s3061_s13  ;;  %p117_p13 = scmp.lt.s32.totalorder %s2031_s30, 3 }
  0x22   : > { %3064 = sst [smem:[#allocation104_spill]] %s3063_s14 }
  0x23   : > { %p118_p0 = pnand %p903_p12, %p117_p13 }
  0x25   : > { %121 = sbr.rel (%p118_p0) target bundleno = 1029 (0x405), region = 28 }
  0x2a   : > { %s3034_s15 = sand.u32 1, %s2023_s29   ;;  %p1058_p1 = scmp.eq.s32.totalorder %s2114_s7, 0 }
  0x2b   : > { %s2144_s16 = sshll.u32 %s3034_s15, 3  ;;  %s138_s17 = sld [smem:[#allocation6]] }
  0x2c   : > { %3065 = sst [smem:[#allocation105_spill]] %s2144_s16  ;;  %s2035_s19 = smov [#allocation2]  }
  0x2d   : > { %s2147_s18 = sld [smem:[#allocation7]]  ;;  %s148_s20 = sshll.u32 %s2035_s19, 4  ;;  %s2149_s20 = int_to_ptr.vmem [resolvable:$true] %s148_s20 }
  0x2e   : > { %s2036_s21 = smov [#allocation3]   ;;  %s2153_s23 = sld [smem:[#allocation6 + $0x1]] }
  0x2f   : > { %s163_s22 = sshll.u32 %s2036_s21, 4  ;;  %s2155_s24 = sld [smem:[#allocation7 + $0x1]]  ;;  %s2151_s22 = int_to_ptr.vmem [resolvable:$true] %s163_s22 }
  0x30   : > { %s2037_s26 = smov [#allocation2 + $0x1]   ;;  %s2166_s12 = scalar_lea.hbm %s3028_s2, 1024 }
  0x31   : > { %s906_s25 = sshll.u32 %s138_s17, 4  ;;  %s178_s27 = sshll.u32 %s2037_s26, 4  ;;  %s2188_s27 = int_to_ptr.vmem [resolvable:$true] %s178_s27 }
  0x32   : > { %s140_s10 = scalar_lea.hbm %s3028_s2, %s906_s25 }
  0x33   : > { %s907_s11 = sshll.u32 %s2147_s18, 4  ;;  %s1133_s15 = scalar_lea.hbm %s140_s10, 16 }
  0x34   : > { %p1134_p2 = scmp.ne.s32.totalorder %s140_s10, %s1133_s15  ;;  %p1138_p5 = scmp.lt.s32.totalorder %s140_s10, %s3028_s2 }
  0x35   : > { %p1139_p6 = scmp.lt.s32.totalorder %s2166_s12, %s1133_s15 }
  0x36   : > { %p1135_p3 = pnand %p1134_p2, %p1058_p1 }
  0x37   : > { %p1140_p7 = por %p1139_p6, %p1138_p5 }
  0x38   : > { %p1136_p4 = pneg %p1135_p3 }
  0x3a   : > { %p1141_p8 = pnand %p1140_p7, %p1136_p4 }
  0x3c   : > { %1144 = shalt.err (!%p1141_p8)  }
  0x3d   : > { %s1145_s17 = scalar_lea.vmem %s2149_s20, 16  ;;  %s2177_s18 = scalar_lea.vmem %s2149_s20, 256 }
  0x3e   : > { %p1146_p9 = scmp.ne.s32.totalorder %s2149_s20, %s1145_s17  ;;  %p1152_p0 = scmp.lt.s32.totalorder %s2149_s20, %s2149_s20 }
  0x3f   : > { %p1153_p2 = scmp.lt.s32.totalorder %s2177_s18, %s1145_s17 }
  0x40   : > { %p1147_p12 = pnand %p1146_p9, %p1058_p1 }
  0x41   : > { %p1154_p3 = por %p1153_p2, %p1152_p0 }
  0x42   : > { %p1148_p13 = pneg %p1147_p12 }
  0x44   : > { %p1155_p5 = pnand %p1154_p3, %p1148_p13 }
  0x46   : > { %1158 = shalt.err (!%p1155_p5)  }
  0x47   : > { %987 = dma.hbm_to_vmem [thread:$0]  (%p1058_p1), %s140_s10, 16, %s2149_s20, [#allocation4] }
  0x48   : > { %s154_s15 = scalar_lea.hbm %s3029_s3, %s907_s11  ;;  %s2195_s8 = scalar_lea.hbm %s3029_s3, 512 }
  0x49   : > { %s1159_s25 = scalar_lea.hbm %s154_s15, 16  ;;  %p1164_p8 = scmp.lt.s32.totalorder %s154_s15, %s3029_s3 }
  0x4a   : > { %p1160_p4 = scmp.ne.s32.totalorder %s154_s15, %s1159_s25  ;;  %p1165_p9 = scmp.lt.s32.totalorder %s2195_s8, %s1159_s25 }
  0x4c   : > { %p1161_p6 = pnand %p1160_p4, %p1058_p1  ;;  %p1166_p12 = por %p1165_p9, %p1164_p8 }
  0x4e   : > { %p1162_p7 = pneg %p1161_p6 }
  0x50   : > { %p1167_p13 = pnand %p1166_p12, %p1162_p7 }
  0x52   : > { %1170 = shalt.err (!%p1167_p13)  }
  0x53   : > { %s1171_s10 = scalar_lea.vmem %s2151_s22, 16  ;;  %s2206_s11 = scalar_lea.vmem %s2151_s22, 256 }
  0x54   : > { %p1172_p0 = scmp.ne.s32.totalorder %s2151_s22, %s1171_s10  ;;  %p1178_p5 = scmp.lt.s32.totalorder %s2151_s22, %s2151_s22 }
  0x55   : > { %p1179_p4 = scmp.lt.s32.totalorder %s2206_s11, %s1171_s10 }
  0x56   : > { %p1173_p2 = pnand %p1172_p0, %p1058_p1 }
  0x57   : > { %p1180_p6 = por %p1179_p4, %p1178_p5 }
  0x58   : > { %p1174_p3 = pneg %p1173_p2 }
  0x5a   : > { %p1181_p8 = pnand %p1180_p6, %p1174_p3 }
  0x5c   : > { %1184 = shalt.err (!%p1181_p8)  }
  0x5d   : > { %988 = dma.hbm_to_vmem [thread:$0]  (%p1058_p1), %s154_s15, 16, %s2151_s22, [#allocation4 + $0x1] }
  0x5e   : > { %s909_s17 = sshll.u32 %s2153_s23, 4  ;;  %s911_s1 = sshll.u32 %s2155_s24, 4 }
  0x5f   : > { %s169_s26 = scalar_lea.hbm %s3028_s2, %s909_s17  ;;  %s2222_s21 = scalar_lea.hbm %s3029_s3, %s911_s1 }
  0x60   : > { %s1185_s10 = scalar_lea.hbm %s169_s26, 16  ;;  %p1190_p13 = scmp.lt.s32.totalorder %s169_s26, %s3028_s2 }
  0x61   : > { %p1186_p7 = scmp.ne.s32.totalorder %s169_s26, %s1185_s10  ;;  %p1191_p0 = scmp.lt.s32.totalorder %s2166_s12, %s1185_s10 }
  0x63   : > { %p1187_p9 = pnand %p1186_p7, %p1058_p1  ;;  %p1192_p2 = por %p1191_p0, %p1190_p13 }
  0x65   : > { %p1188_p12 = pneg %p1187_p9 }
  0x67   : > { %p1193_p3 = pnand %p1192_p2, %p1188_p12 }
  0x69   : > { %1196 = shalt.err (!%p1193_p3)  }
  0x6a   : > { %s1197_s23 = scalar_lea.vmem %s2188_s27, 16  ;;  %p1204_p8 = scmp.lt.s32.totalorder %s2188_s27, %s2149_s20 }
  0x6b   : > { %p1198_p5 = scmp.ne.s32.totalorder %s2188_s27, %s1197_s23  ;;  %p1205_p7 = scmp.lt.s32.totalorder %s2177_s18, %s1197_s23 }
  0x6d   : > { %p1199_p4 = pnand %p1198_p5, %p1058_p1  ;;  %p1206_p9 = por %p1205_p7, %p1204_p8 }
  0x6f   : > { %p1200_p6 = pneg %p1199_p4 }
  0x71   : > { %p1207_p11 = pnand %p1206_p9, %p1200_p6 }
  0x73   : > { %1210 = shalt.err (!%p1207_p11)  }
  0x74   : > { %989 = dma.hbm_to_vmem [thread:$0]  (%p1058_p1), %s169_s26, 16, %s2188_s27, [#allocation4] }
  0x75   : > { %s2240_s0 = sld [smem:[#allocation6 + $0x2]]  ;;  %s2038_s14 = smov [#allocation3 + $0x1]  }
  0x76   : > { %s193_s24 = sshll.u32 %s2038_s14, 4  ;;  %s2039_s15 = smov [#allocation2 + $0x2]   ;;  %s194_s24 = int_to_ptr.vmem [resolvable:$true] %s193_s24 }
  0x77   : > { %s208_s17 = sshll.u32 %s2039_s15, 4  ;;  %s1211_s1 = scalar_lea.hbm %s2222_s21, 16  ;;  %s209_s17 = int_to_ptr.vmem [resolvable:$true] %s208_s17 }
  0x78   : > { %p1212_p12 = scmp.ne.s32.totalorder %s2222_s21, %s1211_s1  ;;  %p1216_p0 = scmp.lt.s32.totalorder %s2222_s21, %s3029_s3 }
  0x79   : > { %p1217_p2 = scmp.lt.s32.totalorder %s2195_s8, %s1211_s1 }
  0x7a   : > { %p1213_p11 = pnand %p1212_p12, %p1058_p1 }
  0x7b   : > { %p1218_p3 = por %p1217_p2, %p1216_p0 }
  0x7c   : > { %p1214_p13 = pneg %p1213_p11 }
  0x7e   : > { %p1219_p5 = pnand %p1218_p3, %p1214_p13 }
  0x80   : > { %1222 = shalt.err (!%p1219_p5)  }
  0x81   : > { %s1223_s27 = scalar_lea.vmem %s194_s24, 16  ;;  %p1230_p7 = scmp.lt.s32.totalorder %s194_s24, %s2151_s22 }
  0x82   : > { %p1224_p4 = scmp.ne.s32.totalorder %s194_s24, %s1223_s27  ;;  %p1231_p9 = scmp.lt.s32.totalorder %s2206_s11, %s1223_s27 }
  0x84   : > { %p1225_p6 = pnand %p1224_p4, %p1058_p1  ;;  %p1232_p12 = por %p1231_p9, %p1230_p7 }
  0x86   : > { %p1226_p8 = pneg %p1225_p6 }
  0x88   : > { %p1233_p11 = pnand %p1232_p12, %p1226_p8 }
  0x8a   : > { %1236 = shalt.err (!%p1233_p11)  }
  0x8b   : > { %990 = dma.hbm_to_vmem [thread:$0]  (%p1058_p1), %s2222_s21, 16, %s194_s24, [#allocation4 + $0x1] }
  0x8c   : > { %s2258_s26 = sld [smem:[#allocation7 + $0x2]]  ;;  %s913_s19 = sshll.u32 %s2240_s0, 4 }
  0x8d   : > { %s2260_s28 = sld [smem:[#allocation6 + $0x3]]  ;;  %s2040_s10 = smov [#allocation3 + $0x2]  }
  0x8e   : > { %s223_s23 = sshll.u32 %s2040_s10, 4  ;;  %s199_s1 = scalar_lea.hbm %s3028_s2, %s913_s19  ;;  %s2266_s23 = int_to_ptr.vmem [resolvable:$true] %s223_s23 }
  0x8f   : > { %s1237_s9 = scalar_lea.hbm %s199_s1, 16  ;;  %p1242_p3 = scmp.lt.s32.totalorder %s199_s1, %s3028_s2 }
  0x90   : > { %p1238_p13 = scmp.ne.s32.totalorder %s199_s1, %s1237_s9  ;;  %p1243_p5 = scmp.lt.s32.totalorder %s2166_s12, %s1237_s9 }
  0x92   : > { %p1239_p0 = pnand %p1238_p13, %p1058_p1  ;;  %p1244_p4 = por %p1243_p5, %p1242_p3 }
  0x94   : > { %p1240_p2 = pneg %p1239_p0 }
  0x96   : > { %p1245_p6 = pnand %p1244_p4, %p1240_p2 }
  0x98   : > { %1248 = shalt.err (!%p1245_p6)  }
  0x99   : > { %s1249_s0 = scalar_lea.vmem %s209_s17, 16  ;;  %p1256_p12 = scmp.lt.s32.totalorder %s209_s17, %s2149_s20 }
  0x9a   : > { %p1250_p8 = scmp.ne.s32.totalorder %s209_s17, %s1249_s0  ;;  %p1257_p11 = scmp.lt.s32.totalorder %s2177_s18, %s1249_s0 }
  0x9c   : > { %p1251_p7 = pnand %p1250_p8, %p1058_p1  ;;  %p1258_p13 = por %p1257_p11, %p1256_p12 }
  0x9e   : > { %p1252_p9 = pneg %p1251_p7 }
  0xa0   : > { %p1259_p0 = pnand %p1258_p13, %p1252_p9 }
  0xa2   : > { %1262 = shalt.err (!%p1259_p0)  }
  0xa3   : > { %991 = dma.hbm_to_vmem [thread:$0]  (%p1058_p1), %s199_s1, 16, %s209_s17, [#allocation4] }
  0xa4   : > { %s2280_s25 = sld [smem:[#allocation7 + $0x3]]  ;;  %s915_s27 = sshll.u32 %s2258_s26, 4 }
  0xa5   : > { %s2041_s19 = smov [#allocation2 + $0x3]   ;;  %s214_s9 = scalar_lea.hbm %s3029_s3, %s915_s27 }
  0xa6   : > { %s238_s10 = sshll.u32 %s2041_s19, 4  ;;  %s917_s21 = sshll.u32 %s2260_s28, 4  ;;  %s239_s10 = int_to_ptr.vmem [resolvable:$true] %s238_s10 }
  0xa7   : > { %s1263_s24 = scalar_lea.hbm %s214_s9, 16  ;;  %p1268_p4 = scmp.lt.s32.totalorder %s214_s9, %s3029_s3 }
  0xa8   : > { %p1264_p2 = scmp.ne.s32.totalorder %s214_s9, %s1263_s24  ;;  %p1269_p6 = scmp.lt.s32.totalorder %s2195_s8, %s1263_s24 }
  0xaa   : > { %p1265_p3 = pnand %p1264_p2, %p1058_p1  ;;  %p1270_p8 = por %p1269_p6, %p1268_p4 }
  0xac   : > { %p1266_p5 = pneg %p1265_p3 }
  0xae   : > { %p1271_p7 = pnand %p1270_p8, %p1266_p5 }
  0xb0   : > { %1274 = shalt.err (!%p1271_p7)  }
  0xb1   : > { %s1275_s17 = scalar_lea.vmem %s2266_s23, 16  ;;  %p1282_p13 = scmp.lt.s32.totalorder %s2266_s23, %s2151_s22 }
  0xb2   : > { %p1276_p9 = scmp.ne.s32.totalorder %s2266_s23, %s1275_s17  ;;  %p1283_p0 = scmp.lt.s32.totalorder %s2206_s11, %s1275_s17 }
  0xb4   : > { %p1277_p12 = pnand %p1276_p9, %p1058_p1  ;;  %p1284_p2 = por %p1283_p0, %p1282_p13 }
  0xb6   : > { %p1278_p11 = pneg %p1277_p12 }
  0xb8   : > { %p1285_p3 = pnand %p1284_p2, %p1278_p11 }
  0xba   : > { %1288 = shalt.err (!%p1285_p3)  }
  0xbb   : > { %992 = dma.hbm_to_vmem [thread:$0]  (%p1058_p1), %s214_s9, 16, %s2266_s23, [#allocation4 + $0x1] }
  0xbc   : > { %s229_s28 = scalar_lea.hbm %s3028_s2, %s917_s21 }
  0xbd   : > { %s1289_s1 = scalar_lea.hbm %s229_s28, 16  ;;  %p1294_p8 = scmp.lt.s32.totalorder %s229_s28, %s3028_s2 }
  0xbe   : > { %p1290_p5 = scmp.ne.s32.totalorder %s229_s28, %s1289_s1  ;;  %p1295_p7 = scmp.lt.s32.totalorder %s2166_s12, %s1289_s1 }
  0xc0   : > { %p1291_p4 = pnand %p1290_p5, %p1058_p1  ;;  %p1296_p9 = por %p1295_p7, %p1294_p8 }
  0xc2   : > { %p1292_p6 = pneg %p1291_p4 }
  0xc4   : > { %p1297_p12 = pnand %p1296_p9, %p1292_p6 }
  0xc6   : > { %1300 = shalt.err (!%p1297_p12)  }
  0xc7   : > { %s1301_s14 = scalar_lea.vmem %s239_s10, 16  ;;  %p1308_p2 = scmp.lt.s32.totalorder %s239_s10, %s2149_s20 }
  0xc8   : > { %p1302_p11 = scmp.ne.s32.totalorder %s239_s10, %s1301_s14  ;;  %p1309_p3 = scmp.lt.s32.totalorder %s2177_s18, %s1301_s14 }
  0xca   : > { %p1303_p13 = pnand %p1302_p11, %p1058_p1  ;;  %p1310_p5 = por %p1309_p3, %p1308_p2 }
  0xcc   : > { %p1304_p0 = pneg %p1303_p13 }
  0xce   : > { %p1311_p4 = pnand %p1310_p5, %p1304_p0 }
  0xd0   : > { %1314 = shalt.err (!%p1311_p4)  }
  0xd1   : > { %993 = dma.hbm_to_vmem [thread:$0]  (%p1058_p1), %s229_s28, 16, %s239_s10, [#allocation4] }
  0xd2   : > { %s919_s23 = sshll.u32 %s2280_s25, 4  ;;  %s2042_s24 = smov [#allocation3 + $0x3]  }
  0xd3   : > { %s244_s21 = scalar_lea.hbm %s3029_s3, %s919_s23  ;;  %s253_s0 = sshll.u32 %s2042_s24, 4  ;;  %s254_s0 = int_to_ptr.vmem [resolvable:$true] %s253_s0 }
  0xd4   : > { %s2322_s17 = sld [smem:[#allocation6 + $0x4]]  ;;  %s1315_s30 = scalar_lea.hbm %s244_s21, 16 }
  0xd5   : > { %p1316_p6 = scmp.ne.s32.totalorder %s244_s21, %s1315_s30  ;;  %p1320_p9 = scmp.lt.s32.totalorder %s244_s21, %s3029_s3 }
  0xd6   : > { %p1321_p12 = scmp.lt.s32.totalorder %s2195_s8, %s1315_s30 }
  0xd7   : > { %p1317_p8 = pnand %p1316_p6, %p1058_p1 }
  0xd8   : > { %p1322_p11 = por %p1321_p12, %p1320_p9 }
  0xd9   : > { %p1318_p7 = pneg %p1317_p8 }
  0xdb   : > { %p1323_p13 = pnand %p1322_p11, %p1318_p7 }
  0xdd   : > { %1326 = shalt.err (!%p1323_p13)  }
  0xde   : > { %s1327_s25 = scalar_lea.vmem %s254_s0, 16  ;;  %p1334_p5 = scmp.lt.s32.totalorder %s254_s0, %s2151_s22 }
  0xdf   : > { %p1328_p0 = scmp.ne.s32.totalorder %s254_s0, %s1327_s25  ;;  %p1335_p4 = scmp.lt.s32.totalorder %s2206_s11, %s1327_s25 }
  0xe1   : > { %p1329_p2 = pnand %p1328_p0, %p1058_p1  ;;  %p1336_p6 = por %p1335_p4, %p1334_p5 }
  0xe3   : > { %p1330_p3 = pneg %p1329_p2 }
  0xe5   : > { %p1337_p8 = pnand %p1336_p6, %p1330_p3 }
  0xe7   : > { %1340 = shalt.err (!%p1337_p8)  }
  0xe8   : > { %994 = dma.hbm_to_vmem [thread:$0]  (%p1058_p1), %s244_s21, 16, %s254_s0, [#allocation4 + $0x1] }
  0xe9   : > { %s2336_s10 = sld [smem:[#allocation7 + $0x4]]  ;;  %s2043_s28 = smov [#allocation2 + $0x4]  }
  0xea   : > { %s268_s27 = sshll.u32 %s2043_s28, 4  ;;  %s2044_s19 = smov [#allocation3 + $0x4]   ;;  %s269_s27 = int_to_ptr.vmem [resolvable:$true] %s268_s27 }
  0xeb   : > { %s283_s14 = sshll.u32 %s2044_s19, 4  ;;  %s2340_s23 = sld [smem:[#allocation6 + $0x5]]  ;;  %s2338_s14 = int_to_ptr.vmem [resolvable:$true] %s283_s14 }
  0xec   : > { %s921_s15 = sshll.u32 %s2322_s17, 4  ;;  %s2045_s26 = smov [#allocation2 + $0x5]  }
  0xed   : > { %s259_s30 = scalar_lea.hbm %s3028_s2, %s921_s15  ;;  %s298_s1 = sshll.u32 %s2045_s26, 4  ;;  %s2359_s1 = int_to_ptr.vmem [resolvable:$true] %s298_s1 }
  0xee   : > { %s1341_s21 = scalar_lea.hbm %s259_s30, 16  ;;  %p1346_p11 = scmp.lt.s32.totalorder %s259_s30, %s3028_s2 }
  0xef   : > { %p1342_p7 = scmp.ne.s32.totalorder %s259_s30, %s1341_s21  ;;  %p1347_p13 = scmp.lt.s32.totalorder %s2166_s12, %s1341_s21 }
  0xf1   : > { %p1343_p9 = pnand %p1342_p7, %p1058_p1  ;;  %p1348_p0 = por %p1347_p13, %p1346_p11 }
  0xf3   : > { %p1344_p12 = pneg %p1343_p9 }
  0xf5   : > { %p1349_p2 = pnand %p1348_p0, %p1344_p12 }
  0xf7   : > { %1352 = shalt.err (!%p1349_p2)  }
  0xf8   : > { %s1353_s17 = scalar_lea.vmem %s269_s27, 16  ;;  %p1360_p6 = scmp.lt.s32.totalorder %s269_s27, %s2149_s20 }
  0xf9   : > { %p1354_p3 = scmp.ne.s32.totalorder %s269_s27, %s1353_s17  ;;  %p1361_p8 = scmp.lt.s32.totalorder %s2177_s18, %s1353_s17 }
  0xfb   : > { %p1355_p5 = pnand %p1354_p3, %p1058_p1  ;;  %p1362_p7 = por %p1361_p8, %p1360_p6 }
  0xfd   : > { %p1356_p4 = pneg %p1355_p5 }
  0xff   : > { %p1363_p9 = pnand %p1362_p7, %p1356_p4 }
 0x101   : > { %1366 = shalt.err (!%p1363_p9)  }
 0x102   : > { %995 = dma.hbm_to_vmem [thread:$0]  (%p1058_p1), %s259_s30, 16, %s269_s27, [#allocation4] }
 0x103   : > { %s923_s28 = sshll.u32 %s2336_s10, 4  ;;  %s2364_s24 = sld [smem:[#allocation7 + $0x5]] }
 0x104   : > { %s274_s9 = scalar_lea.hbm %s3029_s3, %s923_s28 }
 0x105   : > { %s1367_s26 = scalar_lea.hbm %s274_s9, 16  ;;  %p1372_p0 = scmp.lt.s32.totalorder %s274_s9, %s3029_s3 }
 0x106   : > { %p1368_p12 = scmp.ne.s32.totalorder %s274_s9, %s1367_s26  ;;  %p1373_p2 = scmp.lt.s32.totalorder %s2195_s8, %s1367_s26 }
 0x108   : > { %p1369_p11 = pnand %p1368_p12, %p1058_p1  ;;  %p1374_p3 = por %p1373_p2, %p1372_p0 }
 0x10a   : > { %p1370_p13 = pneg %p1369_p11 }
 0x10c   : > { %p1375_p5 = pnand %p1374_p3, %p1370_p13 }
 0x10e   : > { %1378 = shalt.err (!%p1375_p5)  }
 0x10f   : > { %s1379_s10 = scalar_lea.vmem %s2338_s14, 16  ;;  %p1386_p7 = scmp.lt.s32.totalorder %s2338_s14, %s2151_s22 }
 0x110   : > { %p1380_p4 = scmp.ne.s32.totalorder %s2338_s14, %s1379_s10  ;;  %p1387_p9 = scmp.lt.s32.totalorder %s2206_s11, %s1379_s10 }
 0x112   : > { %p1381_p6 = pnand %p1380_p4, %p1058_p1  ;;  %p1388_p12 = por %p1387_p9, %p1386_p7 }
 0x114   : > { %p1382_p8 = pneg %p1381_p6 }
 0x116   : > { %p1389_p11 = pnand %p1388_p12, %p1382_p8 }
 0x118   : > { %1392 = shalt.err (!%p1389_p11)  }
 0x119   : > { %996 = dma.hbm_to_vmem [thread:$0]  (%p1058_p1), %s274_s9, 16, %s2338_s14, [#allocation4 + $0x1] }
 0x11a   : > { %s925_s27 = sshll.u32 %s2340_s23, 4  ;;  %s2046_s28 = smov [#allocation3 + $0x5]  }
 0x11b   : > { %s289_s17 = scalar_lea.hbm %s3028_s2, %s925_s27  ;;  %s313_s19 = sshll.u32 %s2046_s28, 4  ;;  %s314_s19 = int_to_ptr.vmem [resolvable:$true] %s313_s19 }
 0x11c   : > { %s1393_s15 = scalar_lea.hbm %s289_s17, 16  ;;  %p1398_p3 = scmp.lt.s32.totalorder %s289_s17, %s3028_s2 }
 0x11d   : > { %p1394_p13 = scmp.ne.s32.totalorder %s289_s17, %s1393_s15  ;;  %p1399_p5 = scmp.lt.s32.totalorder %s2166_s12, %s1393_s15 }
 0x11f   : > { %p1395_p0 = pnand %p1394_p13, %p1058_p1  ;;  %p1400_p4 = por %p1399_p5, %p1398_p3 }
 0x121   : > { %p1396_p2 = pneg %p1395_p0 }
 0x123   : > { %p1401_p6 = pnand %p1400_p4, %p1396_p2 }
 0x125   : > { %1404 = shalt.err (!%p1401_p6)  }
 0x126   : > { %s1405_s14 = scalar_lea.vmem %s2359_s1, 16  ;;  %p1412_p12 = scmp.lt.s32.totalorder %s2359_s1, %s2149_s20 }
 0x127   : > { %p1406_p8 = scmp.ne.s32.totalorder %s2359_s1, %s1405_s14  ;;  %p1413_p11 = scmp.lt.s32.totalorder %s2177_s18, %s1405_s14 }
 0x129   : > { %p1407_p7 = pnand %p1406_p8, %p1058_p1  ;;  %p1414_p13 = por %p1413_p11, %p1412_p12 }
 0x12b   : > { %p1408_p9 = pneg %p1407_p7 }
 0x12d   : > { %p1415_p0 = pnand %p1414_p13, %p1408_p9 }
 0x12f   : > { %1418 = shalt.err (!%p1415_p0)  }
 0x130   : > { %997 = dma.hbm_to_vmem [thread:$0]  (%p1058_p1), %s289_s17, 16, %s2359_s1, [#allocation4] }
 0x131   : > { %s2402_s23 = sld [smem:[#allocation6 + $0x6]]  ;;  %s927_s9 = sshll.u32 %s2364_s24, 4 }
 0x132   : > { %s304_s27 = scalar_lea.hbm %s3029_s3, %s927_s9  ;;  %s2047_s30 = smov [#allocation2 + $0x6]  }
 0x133   : > { %s328_s25 = sshll.u32 %s2047_s30, 4  ;;  %s1419_s28 = scalar_lea.hbm %s304_s27, 16  ;;  %s329_s25 = int_to_ptr.vmem [resolvable:$true] %s328_s25 }
 0x134   : > { %p1420_p2 = scmp.ne.s32.totalorder %s304_s27, %s1419_s28  ;;  %p1424_p4 = scmp.lt.s32.totalorder %s304_s27, %s3029_s3 }
 0x135   : > { %p1425_p6 = scmp.lt.s32.totalorder %s2195_s8, %s1419_s28 }
 0x136   : > { %p1421_p3 = pnand %p1420_p2, %p1058_p1 }
 0x137   : > { %p1426_p8 = por %p1425_p6, %p1424_p4 }
 0x138   : > { %p1422_p5 = pneg %p1421_p3 }
 0x13a   : > { %p1427_p7 = pnand %p1426_p8, %p1422_p5 }
 0x13c   : > { %1430 = shalt.err (!%p1427_p7)  }
 0x13d   : > { %s1431_s1 = scalar_lea.vmem %s314_s19, 16  ;;  %p1438_p13 = scmp.lt.s32.totalorder %s314_s19, %s2151_s22 }
 0x13e   : > { %p1432_p9 = scmp.ne.s32.totalorder %s314_s19, %s1431_s1  ;;  %p1439_p0 = scmp.lt.s32.totalorder %s2206_s11, %s1431_s1 }
 0x140   : > { %p1433_p12 = pnand %p1432_p9, %p1058_p1  ;;  %p1440_p2 = por %p1439_p0, %p1438_p13 }
 0x142   : > { %p1434_p11 = pneg %p1433_p12 }
 0x144   : > { %p1441_p3 = pnand %p1440_p2, %p1434_p11 }
 0x146   : > { %1444 = shalt.err (!%p1441_p3)  }
 0x147   : > { %998 = dma.hbm_to_vmem [thread:$0]  (%p1058_p1), %s304_s27, 16, %s314_s19, [#allocation4 + $0x1] }
 0x148   : > { %s2420_s24 = sld [smem:[#allocation7 + $0x6]]  ;;  %s929_s21 = sshll.u32 %s2402_s23, 4 }
 0x149   : > { %s2422_s17 = sld [smem:[#allocation6 + $0x7]]  ;;  %s2048_s14 = smov [#allocation3 + $0x6]  }
 0x14a   : > { %s343_s9 = sshll.u32 %s2048_s14, 4  ;;  %s319_s30 = scalar_lea.hbm %s3028_s2, %s929_s21  ;;  %s2428_s9 = int_to_ptr.vmem [resolvable:$true] %s343_s9 }
 0x14b   : > { %s1445_s28 = scalar_lea.hbm %s319_s30, 16  ;;  %p1450_p8 = scmp.lt.s32.totalorder %s319_s30, %s3028_s2 }
 0x14c   : > { %p1446_p5 = scmp.ne.s32.totalorder %s319_s30, %s1445_s28  ;;  %p1451_p7 = scmp.lt.s32.totalorder %s2166_s12, %s1445_s28 }
 0x14e   : > { %p1447_p4 = pnand %p1446_p5, %p1058_p1  ;;  %p1452_p9 = por %p1451_p7, %p1450_p8 }
 0x150   : > { %p1448_p6 = pneg %p1447_p4 }
 0x152   : > { %p1453_p12 = pnand %p1452_p9, %p1448_p6 }
 0x154   : > { %1456 = shalt.err (!%p1453_p12)  }
 0x155   : > { %s1457_s23 = scalar_lea.vmem %s329_s25, 16  ;;  %p1464_p2 = scmp.lt.s32.totalorder %s329_s25, %s2149_s20 }
 0x156   : > { %p1458_p11 = scmp.ne.s32.totalorder %s329_s25, %s1457_s23  ;;  %p1465_p3 = scmp.lt.s32.totalorder %s2177_s18, %s1457_s23 }
 0x158   : > { %p1459_p13 = pnand %p1458_p11, %p1058_p1  ;;  %p1466_p5 = por %p1465_p3, %p1464_p2 }
 0x15a   : > { %p1460_p0 = pneg %p1459_p13 }
 0x15c   : > { %p1467_p4 = pnand %p1466_p5, %p1460_p0 }
 0x15e   : > { %1470 = shalt.err (!%p1467_p4)  }
 0x15f   : > { %999 = dma.hbm_to_vmem [thread:$0]  (%p1058_p1), %s319_s30, 16, %s329_s25, [#allocation4] }
 0x160   : > { %s2442_s15 = sld [smem:[#allocation7 + $0x7]]  ;;  %s931_s26 = sshll.u32 %s2420_s24, 4 }
 0x161   : > { %s2049_s1 = smov [#allocation2 + $0x7]   ;;  %s334_s10 = scalar_lea.hbm %s3029_s3, %s931_s26 }
 0x162   : > { %s358_s21 = sshll.u32 %s2049_s1, 4  ;;  %s933_s28 = sshll.u32 %s2422_s17, 4  ;;  %s359_s21 = int_to_ptr.vmem [resolvable:$true] %s358_s21 }
 0x163   : > { %s1471_s19 = scalar_lea.hbm %s334_s10, 16  ;;  %p1476_p9 = scmp.lt.s32.totalorder %s334_s10, %s3029_s3 }
 0x164   : > { %p1472_p6 = scmp.ne.s32.totalorder %s334_s10, %s1471_s19  ;;  %p1477_p12 = scmp.lt.s32.totalorder %s2195_s8, %s1471_s19 }
 0x166   : > { %p1473_p8 = pnand %p1472_p6, %p1058_p1  ;;  %p1478_p11 = por %p1477_p12, %p1476_p9 }
 0x168   : > { %p1474_p7 = pneg %p1473_p8 }
 0x16a   : > { %p1479_p13 = pnand %p1478_p11, %p1474_p7 }
 0x16c   : > { %1482 = shalt.err (!%p1479_p13)  }
 0x16d   : > { %s1483_s25 = scalar_lea.vmem %s2428_s9, 16  ;;  %p1490_p5 = scmp.lt.s32.totalorder %s2428_s9, %s2151_s22 }
 0x16e   : > { %p1484_p0 = scmp.ne.s32.totalorder %s2428_s9, %s1483_s25  ;;  %p1491_p4 = scmp.lt.s32.totalorder %s2206_s11, %s1483_s25 }
 0x170   : > { %p1485_p2 = pnand %p1484_p0, %p1058_p1  ;;  %p1492_p6 = por %p1491_p4, %p1490_p5 }
 0x172   : > { %p1486_p3 = pneg %p1485_p2 }
 0x174   : > { %p1493_p8 = pnand %p1492_p6, %p1486_p3 }
 0x176   : > { %1496 = shalt.err (!%p1493_p8)  }
 0x177   : > { %1000 = dma.hbm_to_vmem [thread:$0]  (%p1058_p1), %s334_s10, 16, %s2428_s9, [#allocation4 + $0x1] }
 0x178   : > { %s349_s30 = scalar_lea.hbm %s3028_s2, %s933_s28 }
 0x179   : > { %s1497_s26 = scalar_lea.hbm %s349_s30, 16  ;;  %p1502_p11 = scmp.lt.s32.totalorder %s349_s30, %s3028_s2 }
 0x17a   : > { %p1498_p7 = scmp.ne.s32.totalorder %s349_s30, %s1497_s26  ;;  %p1503_p13 = scmp.lt.s32.totalorder %s2166_s12, %s1497_s26 }
 0x17c   : > { %p1499_p9 = pnand %p1498_p7, %p1058_p1  ;;  %p1504_p0 = por %p1503_p13, %p1502_p11 }
 0x17e   : > { %p1500_p12 = pneg %p1499_p9 }
 0x180   : > { %p1505_p2 = pnand %p1504_p0, %p1500_p12 }
 0x182   : > { %1508 = shalt.err (!%p1505_p2)  }
 0x183   : > { %s1509_s0 = scalar_lea.vmem %s359_s21, 16  ;;  %p1516_p6 = scmp.lt.s32.totalorder %s359_s21, %s2149_s20 }
 0x184   : > { %p1510_p3 = scmp.ne.s32.totalorder %s359_s21, %s1509_s0  ;;  %p1517_p8 = scmp.lt.s32.totalorder %s2177_s18, %s1509_s0 }
 0x186   : > { %p1511_p5 = pnand %p1510_p3, %p1058_p1  ;;  %p1518_p7 = por %p1517_p8, %p1516_p6 }
 0x188   : > { %p1512_p4 = pneg %p1511_p5 }
 0x18a   : > { %p1519_p9 = pnand %p1518_p7, %p1512_p4 }
 0x18c   : > { %1522 = shalt.err (!%p1519_p9)  }
 0x18d   : > { %1001 = dma.hbm_to_vmem [thread:$0]  (%p1058_p1), %s349_s30, 16, %s359_s21, [#allocation4] }
 0x18e   : > { %s935_s9 = sshll.u32 %s2442_s15, 4  ;;  %s2050_s27 = smov [#allocation3 + $0x7]  }
 0x18f   : > { %s364_s19 = scalar_lea.hbm %s3029_s3, %s935_s9  ;;  %s373_s23 = sshll.u32 %s2050_s27, 4  ;;  %s374_s23 = int_to_ptr.vmem [resolvable:$true] %s373_s23 }
 0x190   : > { %s377_s25 = sadd.s32 1, %s2114_s7  ;;  %s1523_s24 = scalar_lea.hbm %s364_s19, 16 }
 0x191   : > { %p1524_p12 = scmp.ne.s32.totalorder %s364_s19, %s1523_s24  ;;  %p1528_p0 = scmp.lt.s32.totalorder %s364_s19, %s3029_s3 }
 0x192   : > { %p1529_p2 = scmp.lt.s32.totalorder %s2195_s8, %s1523_s24 }
 0x193   : > { %p1525_p11 = pnand %p1524_p12, %p1058_p1 }
 0x194   : > { %p1530_p3 = por %p1529_p2, %p1528_p0 }
 0x195   : > { %p1526_p13 = pneg %p1525_p11 }
 0x197   : > { %p1531_p5 = pnand %p1530_p3, %p1526_p13 }
 0x199   : > { %1534 = shalt.err (!%p1531_p5)  }
 0x19a   : > { %s1535_s15 = scalar_lea.vmem %s374_s23, 16  ;;  %p1542_p7 = scmp.lt.s32.totalorder %s374_s23, %s2151_s22 }
 0x19b   : > { %p1536_p4 = scmp.ne.s32.totalorder %s374_s23, %s1535_s15  ;;  %p1543_p9 = scmp.lt.s32.totalorder %s2206_s11, %s1535_s15 }
 0x19d   : > { %p1537_p6 = pnand %p1536_p4, %p1058_p1  ;;  %p1544_p12 = por %p1543_p9, %p1542_p7 }
 0x19f   : > { %p1538_p8 = pneg %p1537_p6 }
 0x1a1   : > { %p1545_p11 = pnand %p1544_p12, %p1538_p8 }
 0x1a3   : > { %1548 = shalt.err (!%p1545_p11)  }
 0x1a4   : > { %1002 = dma.hbm_to_vmem [thread:$0]  (%p1058_p1), %s364_s19, 16, %s374_s23, [#allocation4 + $0x1] }
 0x1a5   : > { %p2497_p0 = scmp.lt.s32.totalorder %s377_s25, 2  ;;  %s382_s30 = sand.u32 1, %s377_s25 }
 0x1a6   : > { %s984_s1 = sshll.u32 %s2114_s7, 3  ;;  %s939_s0 = sshll.u32 %s382_s30, 3 }
 0x1a7   : > { %s2502_s14 = sadd.s32 8, %s984_s1  ;;  %s940_s28 = sshll.u32 %s382_s30, 1 }
 0x1a8   : > { %3067 = sst [smem:[#allocation106_spill]] %s2502_s14  ;;  %s2509_s27 = scalar_lea.vmem [#allocation2], %s939_s0 }
 0x1a9   : > { %s1004_s9 = scalar_select %p2497_p0, [#allocation6], [#allocation76] }
 0x1aa   : > { %s1005_s10 = scalar_select %p2497_p0, %s2502_s14, 0 }
 0x1ab   : > { %3068 = sst [smem:[#allocation107_spill]] %s2509_s27  ;;  %s398_s23 = sshll.u32 %s2509_s27, 4  ;;  %s2512_s23 = int_to_ptr.vmem [resolvable:$true] %s398_s23 }
 0x1ac   : > { %s384_s19 = sld [smem:[%s1004_s9 + %s1005_s10]]  ;;  %s2514_s25 = scalar_lea.sflag [#allocation4], %s940_s28 }
 0x1ad   : > { %s2517_s24 = scalar_lea.sflag %s2514_s25, 1 [#allocation4]  ;;  %s2521_s26 = scalar_lea.vmem [#allocation3], %s939_s0 }
 0x1ae   : > { %s1007_s17 = scalar_select %p2497_p0, [#allocation7], [#allocation77] }
 0x1af   : > { %s415_s15 = sshll.u32 %s2521_s26, 4  ;;  %s419_s30 = sadd.s32 1, %s2502_s14  ;;  %s2527_s15 = int_to_ptr.vmem [resolvable:$true] %s415_s15 }
 0x1b0   : > { %s2525_s1 = sld [smem:[%s1007_s17 + %s1005_s10]]  ;;  %s803_s6 = scalar_lea.vmem %s2509_s27, 1 [#allocation2] }
 0x1b1   : > { %s432_s13 = sshll.u32 %s803_s6, 4  ;;  %s2555_s13 = int_to_ptr.vmem [resolvable:$true] %s432_s13 }
 0x1b2   : > { %s938_s9 = sshll.u32 %s384_s19, 4 }
 0x1b3   : > { %s386_s4 = scalar_lea.hbm %s3028_s2, %s938_s9 }
 0x1b4   : > { %s1549_s29 = scalar_lea.hbm %s386_s4, 16  ;;  %p1554_p3 = scmp.lt.s32.totalorder %s386_s4, %s3028_s2 }
 0x1b5   : > { %p1550_p1 = scmp.ne.s32.totalorder %s386_s4, %s1549_s29  ;;  %p1555_p5 = scmp.lt.s32.totalorder %s2166_s12, %s1549_s29 }
 0x1b7   : > { %p1551_p13 = pnand %p1550_p1, %p2497_p0  ;;  %p1556_p4 = por %p1555_p5, %p1554_p3 }
 0x1b9   : > { %p1552_p2 = pneg %p1551_p13 }
 0x1bb   : > { %p1557_p6 = pnand %p1556_p4, %p1552_p2 }
 0x1bd   : > { %1560 = shalt.err (!%p1557_p6)  }
 0x1be   : > { %s1561_s5 = scalar_lea.vmem %s2512_s23, 16  ;;  %p1568_p12 = scmp.lt.s32.totalorder %s2512_s23, %s2149_s20 }
 0x1bf   : > { %p1562_p8 = scmp.ne.s32.totalorder %s2512_s23, %s1561_s5  ;;  %p1569_p11 = scmp.lt.s32.totalorder %s2177_s18, %s1561_s5 }
 0x1c1   : > { %p1563_p7 = pnand %p1562_p8, %p2497_p0  ;;  %p1570_p1 = por %p1569_p11, %p1568_p12 }
 0x1c3   : > { %p1564_p9 = pneg %p1563_p7 }
 0x1c5   : > { %p1571_p13 = pnand %p1570_p1, %p1564_p9 }
 0x1c7   : > { %1574 = shalt.err (!%p1571_p13)  }
 0x1c8   : > { %1006 = dma.hbm_to_vmem [thread:$0]  (%p2497_p0), %s386_s4, 16, %s2512_s23, %s2514_s25 }
 0x1c9   : > { %s1010_s6 = scalar_select %p2497_p0, [#allocation6], [#allocation78] }
 0x1ca   : > { %s3089_s30 = smov (!%p2497_p0, %s419_s30), 0  ;;  %s941_s29 = sshll.u32 %s2525_s1, 4 }
 0x1cb   : > { %s404_s19 = scalar_lea.hbm %s3029_s3, %s941_s29  ;;  %s2560_s17 = sld [smem:[%s1010_s6 + %s3089_s30]] }
 0x1cc   : > { %s1575_s9 = scalar_lea.hbm %s404_s19, 16  ;;  %p1580_p4 = scmp.lt.s32.totalorder %s404_s19, %s3029_s3 }
 0x1cd   : > { %p1576_p2 = scmp.ne.s32.totalorder %s404_s19, %s1575_s9  ;;  %p1581_p6 = scmp.lt.s32.totalorder %s2195_s8, %s1575_s9 }
 0x1cf   : > { %p1577_p3 = pnand %p1576_p2, %p2497_p0  ;;  %p1582_p8 = por %p1581_p6, %p1580_p4 }
 0x1d1   : > { %p1578_p5 = pneg %p1577_p3 }
 0x1d3   : > { %p1583_p7 = pnand %p1582_p8, %p1578_p5 }
 0x1d5   : > { %1586 = shalt.err (!%p1583_p7)  }
 0x1d6   : > { %s1587_s23 = scalar_lea.vmem %s2527_s15, 16  ;;  %p1594_p1 = scmp.lt.s32.totalorder %s2527_s15, %s2151_s22 }
 0x1d7   : > { %p1588_p9 = scmp.ne.s32.totalorder %s2527_s15, %s1587_s23  ;;  %p1595_p13 = scmp.lt.s32.totalorder %s2206_s11, %s1587_s23 }
 0x1d9   : > { %p1589_p12 = pnand %p1588_p9, %p2497_p0  ;;  %p1596_p2 = por %p1595_p13, %p1594_p1 }
 0x1db   : > { %p1590_p11 = pneg %p1589_p12 }
 0x1dd   : > { %p1597_p3 = pnand %p1596_p2, %p1590_p11 }
 0x1df   : > { %1600 = shalt.err (!%p1597_p3)  }
 0x1e0   : > { %1009 = dma.hbm_to_vmem [thread:$0]  (%p2497_p0), %s404_s19, 16, %s2527_s15, %s2517_s24 }
 0x1e1   : > { %s1013_s1 = scalar_select %p2497_p0, [#allocation7], [#allocation79] }
 0x1e2   : > { %s808_s0 = scalar_lea.vmem %s2521_s26, 1 [#allocation3]  ;;  %s451_s5 = sadd.s32 2, %s2502_s14 }
 0x1e3   : > { %s2583_s6 = sld [smem:[%s1013_s1 + %s3089_s30]]  ;;  %s447_s29 = sshll.u32 %s808_s0, 4  ;;  %s2585_s29 = int_to_ptr.vmem [resolvable:$true] %s447_s29 }
 0x1e4   : > { %s813_s16 = scalar_lea.vmem %s2509_s27, 2 [#allocation2]  ;;  %s943_s10 = sshll.u32 %s2560_s17, 4 }
 0x1e5   : > { %s464_s9 = sshll.u32 %s813_s16, 4  ;;  %s422_s23 = scalar_lea.hbm %s3028_s2, %s943_s10  ;;  %s2592_s9 = int_to_ptr.vmem [resolvable:$true] %s464_s9 }
 0x1e6   : > { %s1601_s15 = scalar_lea.hbm %s422_s23, 16  ;;  %p1606_p8 = scmp.lt.s32.totalorder %s422_s23, %s3028_s2 }
 0x1e7   : > { %p1602_p5 = scmp.ne.s32.totalorder %s422_s23, %s1601_s15  ;;  %p1607_p7 = scmp.lt.s32.totalorder %s2166_s12, %s1601_s15 }
 0x1e9   : > { %p1603_p4 = pnand %p1602_p5, %p2497_p0  ;;  %p1608_p9 = por %p1607_p7, %p1606_p8 }
 0x1eb   : > { %p1604_p6 = pneg %p1603_p4 }
 0x1ed   : > { %p1609_p12 = pnand %p1608_p9, %p1604_p6 }
 0x1ef   : > { %1612 = shalt.err (!%p1609_p12)  }
 0x1f0   : > { %s1613_s17 = scalar_lea.vmem %s2555_s13, 16  ;;  %p1620_p2 = scmp.lt.s32.totalorder %s2555_s13, %s2149_s20 }
 0x1f1   : > { %p1614_p11 = scmp.ne.s32.totalorder %s2555_s13, %s1613_s17  ;;  %p1621_p3 = scmp.lt.s32.totalorder %s2177_s18, %s1613_s17 }
 0x1f3   : > { %p1615_p1 = pnand %p1614_p11, %p2497_p0  ;;  %p1622_p5 = por %p1621_p3, %p1620_p2 }
 0x1f5   : > { %p1616_p13 = pneg %p1615_p1 }
 0x1f7   : > { %p1623_p4 = pnand %p1622_p5, %p1616_p13 }
 0x1f9   : > { %1626 = shalt.err (!%p1623_p4)  }
 0x1fa   : > { %1012 = dma.hbm_to_vmem [thread:$0]  (%p2497_p0), %s422_s23, 16, %s2555_s13, %s2514_s25 }
 0x1fb   : > { %s1016_s1 = scalar_select %p2497_p0, [#allocation6], [#allocation80] }
 0x1fc   : > { %s945_s0 = sshll.u32 %s2583_s6, 4  ;;  %s818_s16 = scalar_lea.vmem %s2521_s26, 2 [#allocation3] }
 0x1fd   : > { %s438_s4 = scalar_lea.hbm %s3029_s3, %s945_s0  ;;  %s479_s15 = sshll.u32 %s818_s16, 4  ;;  %s2641_s15 = int_to_ptr.vmem [resolvable:$true] %s479_s15 }
 0x1fe   : > { %s1627_s19 = scalar_lea.hbm %s438_s4, 16  ;;  %p1632_p9 = scmp.lt.s32.totalorder %s438_s4, %s3029_s3 }
 0x1ff   : > { %p1628_p6 = scmp.ne.s32.totalorder %s438_s4, %s1627_s19  ;;  %p1633_p12 = scmp.lt.s32.totalorder %s2195_s8, %s1627_s19 }
 0x201   : > { %p1629_p8 = pnand %p1628_p6, %p2497_p0  ;;  %p1634_p11 = por %p1633_p12, %p1632_p9 }
 0x203   : > { %p1630_p7 = pneg %p1629_p8 }
 0x205   : > { %p1635_p1 = pnand %p1634_p11, %p1630_p7 }
 0x207   : > { %1638 = shalt.err (!%p1635_p1)  }
 0x208   : > { %s1639_s13 = scalar_lea.vmem %s2585_s29, 16  ;;  %p1646_p5 = scmp.lt.s32.totalorder %s2585_s29, %s2151_s22 }
 0x209   : > { %p1640_p13 = scmp.ne.s32.totalorder %s2585_s29, %s1639_s13  ;;  %p1647_p4 = scmp.lt.s32.totalorder %s2206_s11, %s1639_s13 }
 0x20b   : > { %p1641_p2 = pnand %p1640_p13, %p2497_p0  ;;  %p1648_p6 = por %p1647_p4, %p1646_p5 }
 0x20d   : > { %p1642_p3 = pneg %p1641_p2 }
 0x20f   : > { %p1649_p8 = pnand %p1648_p6, %p1642_p3 }
 0x211   : > { %1652 = shalt.err (!%p1649_p8)  }
 0x212   : > { %1015 = dma.hbm_to_vmem [thread:$0]  (%p2497_p0), %s438_s4, 16, %s2585_s29, %s2517_s24 }
 0x213   : > { %s3091_s5 = smov (!%p2497_p0, %s451_s5), 0  ;;  %s483_s16 = sadd.s32 3, %s2502_s14 }
 0x214   : > { %s1019_s6 = scalar_select %p2497_p0, [#allocation7], [#allocation81] }
 0x215   : > { %s452_s23 = sld [smem:[%s1016_s1 + %s3091_s5]]  ;;  %s3093_s16 = smov (!%p2497_p0, %s483_s16), 0 }
 0x216   : > { %s2643_s0 = sld [smem:[%s1019_s6 + %s3091_s5]]  ;;  %s823_s29 = scalar_lea.vmem %s2509_s27, 3 [#allocation2] }
 0x217   : > { %s1022_s10 = scalar_select %p2497_p0, [#allocation6], [#allocation82] }
 0x218   : > { %s828_s28 = scalar_lea.vmem %s2521_s26, 3 [#allocation3]  ;;  %s496_s19 = sshll.u32 %s823_s29, 4  ;;  %s2657_s19 = int_to_ptr.vmem [resolvable:$true] %s496_s19 }
 0x219   : > { %s2655_s4 = sld [smem:[%s1022_s10 + %s3093_s16]] }
 0x21b   : > { %s947_s1 = sshll.u32 %s452_s23, 4 }
 0x21c   : > { %s454_s17 = scalar_lea.hbm %s3028_s2, %s947_s1  ;;  %s949_s13 = sshll.u32 %s2643_s0, 4 }
 0x21d   : > { %s1653_s6 = scalar_lea.hbm %s454_s17, 16  ;;  %p1658_p11 = scmp.lt.s32.totalorder %s454_s17, %s3028_s2 }
 0x21e   : > { %p1654_p7 = scmp.ne.s32.totalorder %s454_s17, %s1653_s6  ;;  %p1659_p1 = scmp.lt.s32.totalorder %s2166_s12, %s1653_s6 }
 0x220   : > { %p1655_p9 = pnand %p1654_p7, %p2497_p0  ;;  %p1660_p13 = por %p1659_p1, %p1658_p11 }
 0x222   : > { %p1656_p12 = pneg %p1655_p9 }
 0x224   : > { %p1661_p2 = pnand %p1660_p13, %p1656_p12 }
 0x226   : > { %1664 = shalt.err (!%p1661_p2)  }
 0x227   : > { %s1665_s23 = scalar_lea.vmem %s2592_s9, 16  ;;  %p1672_p6 = scmp.lt.s32.totalorder %s2592_s9, %s2149_s20 }
 0x228   : > { %p1666_p3 = scmp.ne.s32.totalorder %s2592_s9, %s1665_s23  ;;  %p1673_p8 = scmp.lt.s32.totalorder %s2177_s18, %s1665_s23 }
 0x22a   : > { %p1667_p5 = pnand %p1666_p3, %p2497_p0  ;;  %p1674_p7 = por %p1673_p8, %p1672_p6 }
 0x22c   : > { %p1668_p4 = pneg %p1667_p5 }
 0x22e   : > { %p1675_p9 = pnand %p1674_p7, %p1668_p4 }
 0x230   : > { %1678 = shalt.err (!%p1675_p9)  }
 0x231   : > { %1018 = dma.hbm_to_vmem [thread:$0]  (%p2497_p0), %s454_s17, 16, %s2592_s9, %s2514_s25 }
 0x232   : > { %s470_s0 = scalar_lea.hbm %s3029_s3, %s949_s13  ;;  %s511_s10 = sshll.u32 %s828_s28, 4  ;;  %s2701_s10 = int_to_ptr.vmem [resolvable:$true] %s511_s10 }
 0x233   : > { %s1679_s29 = scalar_lea.hbm %s470_s0, 16  ;;  %p1684_p13 = scmp.lt.s32.totalorder %s470_s0, %s3029_s3 }
 0x234   : > { %p1680_p12 = scmp.ne.s32.totalorder %s470_s0, %s1679_s29  ;;  %p1685_p2 = scmp.lt.s32.totalorder %s2195_s8, %s1679_s29 }
 0x236   : > { %p1681_p11 = pnand %p1680_p12, %p2497_p0  ;;  %p1686_p3 = por %p1685_p2, %p1684_p13 }
 0x238   : > { %p1682_p1 = pneg %p1681_p11 }
 0x23a   : > { %p1687_p5 = pnand %p1686_p3, %p1682_p1 }
 0x23c   : > { %1690 = shalt.err (!%p1687_p5)  }
 0x23d   : > { %s1691_s9 = scalar_lea.vmem %s2641_s15, 16  ;;  %p1698_p7 = scmp.lt.s32.totalorder %s2641_s15, %s2151_s22 }
 0x23e   : > { %p1692_p4 = scmp.ne.s32.totalorder %s2641_s15, %s1691_s9  ;;  %p1699_p9 = scmp.lt.s32.totalorder %s2206_s11, %s1691_s9 }
 0x240   : > { %p1693_p6 = pnand %p1692_p4, %p2497_p0  ;;  %p1700_p12 = por %p1699_p9, %p1698_p7 }
 0x242   : > { %p1694_p8 = pneg %p1693_p6 }
 0x244   : > { %p1701_p11 = pnand %p1700_p12, %p1694_p8 }
 0x246   : > { %1704 = shalt.err (!%p1701_p11)  }
 0x247   : > { %s3069_s28 = sld [smem:[#allocation106_spill]]  ;;  %s951_s5 = sshll.u32 %s2655_s4, 4 }
 0x248   : > { %1021 = dma.hbm_to_vmem [thread:$0]  (%p2497_p0), %s470_s0, 16, %s2641_s15, %s2517_s24 }
 0x249   : > { %s486_s6 = scalar_lea.hbm %s3028_s2, %s951_s5 }
 0x24a   : > { %s1705_s7 = scalar_lea.hbm %s486_s6, 16  ;;  %p1710_p3 = scmp.lt.s32.totalorder %s486_s6, %s3028_s2 }
 0x24b   : > { %p1706_p1 = scmp.ne.s32.totalorder %s486_s6, %s1705_s7  ;;  %p1711_p5 = scmp.lt.s32.totalorder %s2166_s12, %s1705_s7 }
 0x24d   : > { %s515_s23 = sadd.s32 4, %s3069_s28  ;;  %p1707_p13 = pnand %p1706_p1, %p2497_p0 }
 0x24e   : > { %p1712_p4 = por %p1711_p5, %p1710_p3 }
 0x24f   : > { %p1708_p2 = pneg %p1707_p13 }
 0x251   : > { %p1713_p6 = pnand %p1712_p4, %p1708_p2 }
 0x253   : > { %1716 = shalt.err (!%p1713_p6)  }
 0x254   : > { %s1717_s15 = scalar_lea.vmem %s2657_s19, 16  ;;  %p1724_p12 = scmp.lt.s32.totalorder %s2657_s19, %s2149_s20 }
 0x255   : > { %p1718_p8 = scmp.ne.s32.totalorder %s2657_s19, %s1717_s15  ;;  %p1725_p11 = scmp.lt.s32.totalorder %s2177_s18, %s1717_s15 }
 0x257   : > { %p1719_p7 = pnand %p1718_p8, %p2497_p0  ;;  %p1726_p1 = por %p1725_p11, %p1724_p12 }
 0x259   : > { %p1720_p9 = pneg %p1719_p7 }
 0x25b   : > { %p1727_p13 = pnand %p1726_p1, %p1720_p9 }
 0x25d   : > { %1730 = shalt.err (!%p1727_p13)  }
 0x25e   : > { %1024 = dma.hbm_to_vmem [thread:$0]  (%p2497_p0), %s486_s6, 16, %s2657_s19, %s2514_s25 }
 0x25f   : > { %s1025_s4 = scalar_select %p2497_p0, [#allocation7], [#allocation83] }
 0x260   : > { %s1028_s0 = scalar_select %p2497_p0, [#allocation6], [#allocation84] }
 0x261   : > { %s500_s1 = sld [smem:[%s1025_s4 + %s3093_s16]]  ;;  %s833_s30 = scalar_lea.vmem %s2509_s27, 4 [#allocation2] }
 0x262   : > { %s3095_s23 = smov (!%p2497_p0, %s515_s23), 0  ;;  %s528_s9 = sshll.u32 %s833_s30, 4  ;;  %s2735_s9 = int_to_ptr.vmem [resolvable:$true] %s528_s9 }
 0x263   : > { %s838_s5 = scalar_lea.vmem %s2521_s26, 4 [#allocation3]  ;;  %s2733_s17 = sld [smem:[%s1028_s0 + %s3095_s23]] }
 0x264   : > { %s1031_s13 = scalar_select %p2497_p0, [#allocation7], [#allocation85] }
 0x265   : > { %s543_s7 = sshll.u32 %s838_s5, 4  ;;  %s547_s19 = sadd.s32 5, %s3069_s28  ;;  %s2745_s7 = int_to_ptr.vmem [resolvable:$true] %s543_s7 }
 0x266   : > { %s2740_s14 = sld [smem:[%s1031_s13 + %s3095_s23]] }
 0x267   : > { %s953_s6 = sshll.u32 %s500_s1, 4 }
 0x268   : > { %s502_s15 = scalar_lea.hbm %s3029_s3, %s953_s6 }
 0x269   : > { %s1731_s4 = scalar_lea.hbm %s502_s15, 16  ;;  %p1736_p4 = scmp.lt.s32.totalorder %s502_s15, %s3029_s3 }
 0x26a   : > { %p1732_p2 = scmp.ne.s32.totalorder %s502_s15, %s1731_s4  ;;  %p1737_p6 = scmp.lt.s32.totalorder %s2195_s8, %s1731_s4 }
 0x26c   : > { %p1733_p3 = pnand %p1732_p2, %p2497_p0  ;;  %p1738_p8 = por %p1737_p6, %p1736_p4 }
 0x26e   : > { %p1734_p5 = pneg %p1733_p3 }
 0x270   : > { %p1739_p7 = pnand %p1738_p8, %p1734_p5 }
 0x272   : > { %1742 = shalt.err (!%p1739_p7)  }
 0x273   : > { %s1743_s23 = scalar_lea.vmem %s2701_s10, 16  ;;  %p1750_p1 = scmp.lt.s32.totalorder %s2701_s10, %s2151_s22 }
 0x274   : > { %p1744_p9 = scmp.ne.s32.totalorder %s2701_s10, %s1743_s23  ;;  %p1751_p13 = scmp.lt.s32.totalorder %s2206_s11, %s1743_s23 }
 0x276   : > { %p1745_p12 = pnand %p1744_p9, %p2497_p0  ;;  %p1752_p2 = por %p1751_p13, %p1750_p1 }
 0x278   : > { %p1746_p11 = pneg %p1745_p12 }
 0x27a   : > { %p1753_p3 = pnand %p1752_p2, %p1746_p11 }
 0x27c   : > { %1756 = shalt.err (!%p1753_p3)  }
 0x27d   : > { %1027 = dma.hbm_to_vmem [thread:$0]  (%p2497_p0), %s502_s15, 16, %s2701_s10, %s2517_s24 }
 0x27e   : > { %s955_s1 = sshll.u32 %s2733_s17, 4  ;;  %s843_s5 = scalar_lea.vmem %s2509_s27, 5 [#allocation2] }
 0x27f   : > { %s518_s29 = scalar_lea.hbm %s3028_s2, %s955_s1  ;;  %s560_s16 = sshll.u32 %s843_s5, 4  ;;  %s2787_s16 = int_to_ptr.vmem [resolvable:$true] %s560_s16 }
 0x280   : > { %s1757_s4 = scalar_lea.hbm %s518_s29, 16  ;;  %p1762_p8 = scmp.lt.s32.totalorder %s518_s29, %s3028_s2 }
 0x281   : > { %p1758_p5 = scmp.ne.s32.totalorder %s518_s29, %s1757_s4  ;;  %p1763_p7 = scmp.lt.s32.totalorder %s2166_s12, %s1757_s4 }
 0x283   : > { %p1759_p4 = pnand %p1758_p5, %p2497_p0  ;;  %p1764_p9 = por %p1763_p7, %p1762_p8 }
 0x285   : > { %p1760_p6 = pneg %p1759_p4 }
 0x287   : > { %p1765_p12 = pnand %p1764_p9, %p1760_p6 }
 0x289   : > { %1768 = shalt.err (!%p1765_p12)  }
 0x28a   : > { %s1769_s10 = scalar_lea.vmem %s2735_s9, 16  ;;  %p1776_p2 = scmp.lt.s32.totalorder %s2735_s9, %s2149_s20 }
 0x28b   : > { %p1770_p11 = scmp.ne.s32.totalorder %s2735_s9, %s1769_s10  ;;  %p1777_p3 = scmp.lt.s32.totalorder %s2177_s18, %s1769_s10 }
 0x28d   : > { %p1771_p1 = pnand %p1770_p11, %p2497_p0  ;;  %p1778_p5 = por %p1777_p3, %p1776_p2 }
 0x28f   : > { %p1772_p13 = pneg %p1771_p1 }
 0x291   : > { %p1779_p4 = pnand %p1778_p5, %p1772_p13 }
 0x293   : > { %1782 = shalt.err (!%p1779_p4)  }
 0x294   : > { %1030 = dma.hbm_to_vmem [thread:$0]  (%p2497_p0), %s518_s29, 16, %s2735_s9, %s2514_s25 }
 0x295   : > { %s957_s17 = sshll.u32 %s2740_s14, 4  ;;  %s848_s5 = scalar_lea.vmem %s2521_s26, 5 [#allocation3] }
 0x296   : > { %s534_s1 = scalar_lea.hbm %s3029_s3, %s957_s17 }
 0x297   : > { %s1783_s13 = scalar_lea.hbm %s534_s1, 16  ;;  %p1788_p9 = scmp.lt.s32.totalorder %s534_s1, %s3029_s3 }
 0x298   : > { %p1784_p6 = scmp.ne.s32.totalorder %s534_s1, %s1783_s13  ;;  %p1789_p12 = scmp.lt.s32.totalorder %s2195_s8, %s1783_s13 }
 0x29a   : > { %p1785_p8 = pnand %p1784_p6, %p2497_p0  ;;  %p1790_p11 = por %p1789_p12, %p1788_p9 }
 0x29c   : > { %p1786_p7 = pneg %p1785_p8 }
 0x29e   : > { %p1791_p1 = pnand %p1790_p11, %p1786_p7 }
 0x2a0   : > { %1794 = shalt.err (!%p1791_p1)  }
 0x2a1   : > { %s1795_s9 = scalar_lea.vmem %s2745_s7, 16  ;;  %p1802_p5 = scmp.lt.s32.totalorder %s2745_s7, %s2151_s22 }
 0x2a2   : > { %p1796_p13 = scmp.ne.s32.totalorder %s2745_s7, %s1795_s9  ;;  %p1803_p4 = scmp.lt.s32.totalorder %s2206_s11, %s1795_s9 }
 0x2a4   : > { %p1797_p2 = pnand %p1796_p13, %p2497_p0  ;;  %p1804_p6 = por %p1803_p4, %p1802_p5 }
 0x2a6   : > { %p1798_p3 = pneg %p1797_p2 }
 0x2a8   : > { %p1805_p8 = pnand %p1804_p6, %p1798_p3 }
 0x2aa   : > { %1808 = shalt.err (!%p1805_p8)  }
 0x2ab   : > { %1033 = dma.hbm_to_vmem [thread:$0]  (%p2497_p0), %s534_s1, 16, %s2745_s7, %s2517_s24 }
 0x2ac   : > { %s1034_s14 = scalar_select %p2497_p0, [#allocation6], [#allocation86] }
 0x2ad   : > { %s3097_s19 = smov (!%p2497_p0, %s547_s19), 0  ;;  %s575_s30 = sshll.u32 %s848_s5, 4  ;;  %s2820_s30 = int_to_ptr.vmem [resolvable:$true] %s575_s30 }
 0x2ae   : > { %s1037_s29 = scalar_select %p2497_p0, [#allocation7], [#allocation87] }
 0x2af   : > { %s548_s0 = sld [smem:[%s1034_s14 + %s3097_s19]]  ;;  %s579_s17 = sadd.s32 6, %s3069_s28 }
 0x2b0   : > { %s2818_s10 = sld [smem:[%s1037_s29 + %s3097_s19]]  ;;  %s853_s15 = scalar_lea.vmem %s2509_s27, 6 [#allocation2] }
 0x2b1   : > { %s1040_s7 = scalar_select %p2497_p0, [#allocation6], [#allocation88] }
 0x2b2   : > { %s3099_s17 = smov (!%p2497_p0, %s579_s17), 0  ;;  %s592_s23 = sshll.u32 %s853_s15, 4  ;;  %s2858_s23 = int_to_ptr.vmem [resolvable:$true] %s592_s23 }
 0x2b3   : > { %s858_s1 = scalar_lea.vmem %s2521_s26, 6 [#allocation3]  ;;  %s2832_s6 = sld [smem:[%s1040_s7 + %s3099_s17]] }
 0x2b5   : > { %s959_s13 = sshll.u32 %s548_s0, 4 }
 0x2b6   : > { %s550_s4 = scalar_lea.hbm %s3028_s2, %s959_s13  ;;  %s961_s9 = sshll.u32 %s2818_s10, 4 }
 0x2b7   : > { %s1809_s14 = scalar_lea.hbm %s550_s4, 16  ;;  %p1814_p11 = scmp.lt.s32.totalorder %s550_s4, %s3028_s2 }
 0x2b8   : > { %p1810_p7 = scmp.ne.s32.totalorder %s550_s4, %s1809_s14  ;;  %p1815_p1 = scmp.lt.s32.totalorder %s2166_s12, %s1809_s14 }
 0x2ba   : > { %p1811_p9 = pnand %p1810_p7, %p2497_p0  ;;  %p1816_p13 = por %p1815_p1, %p1814_p11 }
 0x2bc   : > { %p1812_p12 = pneg %p1811_p9 }
 0x2be   : > { %p1817_p2 = pnand %p1816_p13, %p1812_p12 }
 0x2c0   : > { %1820 = shalt.err (!%p1817_p2)  }
 0x2c1   : > { %s1821_s0 = scalar_lea.vmem %s2787_s16, 16  ;;  %p1828_p6 = scmp.lt.s32.totalorder %s2787_s16, %s2149_s20 }
 0x2c2   : > { %p1822_p3 = scmp.ne.s32.totalorder %s2787_s16, %s1821_s0  ;;  %p1829_p8 = scmp.lt.s32.totalorder %s2177_s18, %s1821_s0 }
 0x2c4   : > { %p1823_p5 = pnand %p1822_p3, %p2497_p0  ;;  %p1830_p7 = por %p1829_p8, %p1828_p6 }
 0x2c6   : > { %p1824_p4 = pneg %p1823_p5 }
 0x2c8   : > { %p1831_p9 = pnand %p1830_p7, %p1824_p4 }
 0x2ca   : > { %1834 = shalt.err (!%p1831_p9)  }
 0x2cb   : > { %1036 = dma.hbm_to_vmem [thread:$0]  (%p2497_p0), %s550_s4, 16, %s2787_s16, %s2514_s25 }
 0x2cc   : > { %s566_s15 = scalar_lea.hbm %s3029_s3, %s961_s9 }
 0x2cd   : > { %s1835_s7 = scalar_lea.hbm %s566_s15, 16  ;;  %p1840_p13 = scmp.lt.s32.totalorder %s566_s15, %s3029_s3 }
 0x2ce   : > { %p1836_p12 = scmp.ne.s32.totalorder %s566_s15, %s1835_s7  ;;  %p1841_p2 = scmp.lt.s32.totalorder %s2195_s8, %s1835_s7 }
 0x2d0   : > { %p1837_p11 = pnand %p1836_p12, %p2497_p0  ;;  %p1842_p3 = por %p1841_p2, %p1840_p13 }
 0x2d2   : > { %p1838_p1 = pneg %p1837_p11 }
 0x2d4   : > { %p1843_p5 = pnand %p1842_p3, %p1838_p1 }
 0x2d6   : > { %1846 = shalt.err (!%p1843_p5)  }
 0x2d7   : > { %s1847_s16 = scalar_lea.vmem %s2820_s30, 16  ;;  %p1854_p7 = scmp.lt.s32.totalorder %s2820_s30, %s2151_s22 }
 0x2d8   : > { %p1848_p4 = scmp.ne.s32.totalorder %s2820_s30, %s1847_s16  ;;  %p1855_p9 = scmp.lt.s32.totalorder %s2206_s11, %s1847_s16 }
 0x2da   : > { %p1849_p6 = pnand %p1848_p4, %p2497_p0  ;;  %p1856_p12 = por %p1855_p9, %p1854_p7 }
 0x2dc   : > { %p1850_p8 = pneg %p1849_p6 }
 0x2de   : > { %p1857_p11 = pnand %p1856_p12, %p1850_p8 }
 0x2e0   : > { %1860 = shalt.err (!%p1857_p11)  }
 0x2e1   : > { %1039 = dma.hbm_to_vmem [thread:$0]  (%p2497_p0), %s566_s15, 16, %s2820_s30, %s2517_s24 }
 0x2e2   : > { %s1043_s19 = scalar_select %p2497_p0, [#allocation7], [#allocation89] }
 0x2e3   : > { %s963_s4 = sshll.u32 %s2832_s6, 4  ;;  %s607_s9 = sshll.u32 %s858_s1, 4  ;;  %s2905_s9 = int_to_ptr.vmem [resolvable:$true] %s607_s9 }
 0x2e4   : > { %s582_s0 = scalar_lea.hbm %s3028_s2, %s963_s4  ;;  %s2886_s27 = sld [smem:[%s1043_s19 + %s3099_s17]] }
 0x2e5   : > { %s1861_s10 = scalar_lea.hbm %s582_s0, 16  ;;  %p1866_p3 = scmp.lt.s32.totalorder %s582_s0, %s3028_s2 }
 0x2e6   : > { %p1862_p1 = scmp.ne.s32.totalorder %s582_s0, %s1861_s10  ;;  %p1867_p5 = scmp.lt.s32.totalorder %s2166_s12, %s1861_s10 }
 0x2e8   : > { %p1863_p13 = pnand %p1862_p1, %p2497_p0  ;;  %p1868_p4 = por %p1867_p5, %p1866_p3 }
 0x2ea   : > { %p1864_p2 = pneg %p1863_p13 }
 0x2ec   : > { %p1869_p6 = pnand %p1868_p4, %p1864_p2 }
 0x2ee   : > { %1872 = shalt.err (!%p1869_p6)  }
 0x2ef   : > { %s1873_s30 = scalar_lea.vmem %s2858_s23, 16  ;;  %p1880_p12 = scmp.lt.s32.totalorder %s2858_s23, %s2149_s20 }
 0x2f0   : > { %p1874_p8 = scmp.ne.s32.totalorder %s2858_s23, %s1873_s30  ;;  %p1881_p11 = scmp.lt.s32.totalorder %s2177_s18, %s1873_s30 }
 0x2f2   : > { %p1875_p7 = pnand %p1874_p8, %p2497_p0  ;;  %p1882_p1 = por %p1881_p11, %p1880_p12 }
 0x2f4   : > { %p1876_p9 = pneg %p1875_p7 }
 0x2f6   : > { %p1883_p13 = pnand %p1882_p1, %p1876_p9 }
 0x2f8   : > { %1886 = shalt.err (!%p1883_p13)  }
 0x2f9   : > { %s3070_s17 = sld [smem:[#allocation107_spill]]  ;;  %s611_s1 = sadd.s32 7, %s3069_s28 }
 0x2fa   : > { %1042 = dma.hbm_to_vmem [thread:$0]  (%p2497_p0), %s582_s0, 16, %s2858_s23, %s2514_s25 }
 0x2fb   : > { %s1046_s6 = scalar_select %p2497_p0, [#allocation6], [#allocation90] }
 0x2fc   : > { %s3101_s1 = smov (!%p2497_p0, %s611_s1), 0  ;;  %s868_s5 = scalar_lea.vmem %s2521_s26, 7 [#allocation3] }
 0x2fd   : > { %s965_s16 = sshll.u32 %s2886_s27, 4  ;;  %s2918_s19 = sld [smem:[%s1046_s6 + %s3101_s1]] }
 0x2fe   : > { %s598_s29 = scalar_lea.hbm %s3029_s3, %s965_s16 }
 0x2ff   : > { %s863_s15 = scalar_lea.vmem %s3070_s17, 7  ;;  %s1887_s0 = scalar_lea.hbm %s598_s29, 16 }
 0x300   : > { %s624_s23 = sshll.u32 %s863_s15, 4  ;;  %p1888_p2 = scmp.ne.s32.totalorder %s598_s29, %s1887_s0  ;;  %s625_s23 = int_to_ptr.vmem [resolvable:$true] %s624_s23 }
 0x301   : > { %p1892_p4 = scmp.lt.s32.totalorder %s598_s29, %s3029_s3  ;;  %p1893_p6 = scmp.lt.s32.totalorder %s2195_s8, %s1887_s0 }
 0x302   : > { %p1889_p3 = pnand %p1888_p2, %p2497_p0 }
 0x303   : > { %p1894_p8 = por %p1893_p6, %p1892_p4 }
 0x304   : > { %p1890_p5 = pneg %p1889_p3 }
 0x306   : > { %p1895_p7 = pnand %p1894_p8, %p1890_p5 }
 0x308   : > { %1898 = shalt.err (!%p1895_p7)  }
 0x309   : > { %s1899_s26 = scalar_lea.vmem %s2905_s9, 16  ;;  %p1906_p1 = scmp.lt.s32.totalorder %s2905_s9, %s2151_s22 }
 0x30a   : > { %p1900_p9 = scmp.ne.s32.totalorder %s2905_s9, %s1899_s26  ;;  %p1907_p13 = scmp.lt.s32.totalorder %s2206_s11, %s1899_s26 }
 0x30c   : > { %p1901_p12 = pnand %p1900_p9, %p2497_p0  ;;  %p1908_p2 = por %p1907_p13, %p1906_p1 }
 0x30e   : > { %p1902_p11 = pneg %p1901_p12 }
 0x310   : > { %p1909_p3 = pnand %p1908_p2, %p1902_p11 }
 0x312   : > { %1912 = shalt.err (!%p1909_p3)  }
 0x313   : > { %s3071_s27 = sld [smem:[#allocation100_spill]]  ;;  %s639_s13 = sshll.u32 %s868_s5, 4  ;;  %s640_s13 = int_to_ptr.vmem [resolvable:$true] %s639_s13 }
 0x314   : > { %1045 = dma.hbm_to_vmem [thread:$0]  (%p2497_p0), %s598_s29, 16, %s2905_s9, %s2517_s24 }
 0x315   : > { %s1049_s7 = scalar_select %p2497_p0, [#allocation7], [#allocation91] }
 0x316   : > { %s967_s17 = sshll.u32 %s2918_s19, 4 }
 0x317   : > { %s628_s6 = sld [smem:[%s1049_s7 + %s3101_s1]]  ;;  %s614_s4 = scalar_lea.hbm %s3028_s2, %s967_s17 }
 0x318   : > { %s1913_s0 = scalar_lea.hbm %s614_s4, 16  ;;  %p1918_p8 = scmp.lt.s32.totalorder %s614_s4, %s3028_s2 }
 0x319   : > { %s643_s30 = sand.u32 1, %s3071_s27  ;;  %p1914_p5 = scmp.ne.s32.totalorder %s614_s4, %s1913_s0 }
 0x31a   : > { %s2948_s14 = sshll.u32 %s643_s30, 3  ;;  %p1919_p7 = scmp.lt.s32.totalorder %s2166_s12, %s1913_s0 }
 0x31b   : > { %p1915_p4 = pnand %p1914_p5, %p2497_p0 }
 0x31c   : > { %p1920_p9 = por %p1919_p7, %p1918_p8 }
 0x31d   : > { %p1916_p6 = pneg %p1915_p4 }
 0x31f   : > { %p1921_p12 = pnand %p1920_p9, %p1916_p6 }
 0x321   : > { %1924 = shalt.err (!%p1921_p12)  }
 0x322   : > { %s1925_s1 = scalar_lea.vmem %s625_s23, 16  ;;  %p1932_p2 = scmp.lt.s32.totalorder %s625_s23, %s2149_s20 }
 0x323   : > { %p1926_p11 = scmp.ne.s32.totalorder %s625_s23, %s1925_s1  ;;  %p1933_p3 = scmp.lt.s32.totalorder %s2177_s18, %s1925_s1 }
 0x325   : > { %p1927_p1 = pnand %p1926_p11, %p2497_p0  ;;  %p1934_p5 = por %p1933_p3, %p1932_p2 }
 0x327   : > { %p1928_p13 = pneg %p1927_p1 }
 0x329   : > { %p1935_p4 = pnand %p1934_p5, %p1928_p13 }
 0x32b   : > { %1938 = shalt.err (!%p1935_p4)  }
 0x32c   : > { %1048 = dma.hbm_to_vmem [thread:$0]  (%p2497_p0), %s614_s4, 16, %s625_s23, %s2514_s25 }
 0x32d   : > { %s972_s12 = sshll.u32 %s643_s30, 1  ;;  %s969_s5 = sshll.u32 %s628_s6, 4 }
 0x32e   : > { %s630_s10 = scalar_lea.hbm %s3029_s3, %s969_s5 }
 0x32f   : > { %s1939_s26 = scalar_lea.hbm %s630_s10, 16  ;;  %p1944_p9 = scmp.lt.s32.totalorder %s630_s10, %s3029_s3 }
 0x330   : > { %p1940_p6 = scmp.ne.s32.totalorder %s630_s10, %s1939_s26  ;;  %p1945_p12 = scmp.lt.s32.totalorder %s2195_s8, %s1939_s26 }
 0x332   : > { %p1941_p8 = pnand %p1940_p6, %p2497_p0  ;;  %p1946_p11 = por %p1945_p12, %p1944_p9 }
 0x334   : > { %p1942_p7 = pneg %p1941_p8 }
 0x336   : > { %p1947_p1 = pnand %p1946_p11, %p1942_p7 }
 0x338   : > { %1950 = shalt.err (!%p1947_p1)  }
 0x339   : > { %s1951_s25 = scalar_lea.vmem %s640_s13, 16  ;;  %p1958_p5 = scmp.lt.s32.totalorder %s640_s13, %s2151_s22 }
 0x33a   : > { %p1952_p13 = scmp.ne.s32.totalorder %s640_s13, %s1951_s25  ;;  %p1959_p4 = scmp.lt.s32.totalorder %s2206_s11, %s1951_s25 }
 0x33c   : > { %p1953_p2 = pnand %p1952_p13, %p2497_p0  ;;  %p1960_p6 = por %p1959_p4, %p1958_p5 }
 0x33e   : > { %p1954_p3 = pneg %p1953_p2 }
 0x340   : > { %p1961_p8 = pnand %p1960_p6, %p1954_p3 }
 0x342   : > { %1964 = shalt.err (!%p1961_p8)  }
 0x343   : > { %s3072_s8 = sld [smem:[#allocation105_spill]]  ;;  %s645_s7 = scalar_lea.vmem [#allocation2], %s2948_s14 }
 0x344   : > { %1051 = dma.hbm_to_vmem [thread:$0]  (%p2497_p0), %s630_s10, 16, %s640_s13, %s2517_s24 }
 0x345   : > { %s647_s30 = scalar_lea.sflag [#allocation4], %s972_s12 }
 0x349   : > { %s133_s23 = scalar_lea.vmem [#allocation8], %s3072_s8 }
 0x34a   : > { %2009 = dma.done.wait %s647_s30, 128 }
 0x34b   : > { %2010 = vsyncadd %s647_s30, 4294967168  ;;  %s877_s17 = scalar_lea.sflag %s647_s30, 1 [#allocation4]  ;;  %s651_s6 = scalar_lea.vmem [#allocation3], %s2948_s14 }
 0x34c   : > { %2011 = dma.done.wait %s877_s17, 128 }
 0x34d   : > { %2012 = vsyncadd %s877_s17, 4294967168  ;;  %v656_v0 = vld [vmem:[%s645_s7] sm:$0xff]  ;;  %v657_v1 = vld [vmem:[%s651_s6] sm:$0xff]  ;;  %s3073_s22 = sld [smem:[#allocation97_spill]]  ;;  %s977_s14 = sshll.u32 %s3071_s27, 7 }
 0x34e   : > { %v658_v2 = vadd.f32 %v657_v1, %v656_v0  ;;  %s3075_s13 = sld [smem:[#allocation108_spill]]  ;;  %s703_s0 = sshll.u32 %s133_s23, 4  ;;  %s704_s0 = int_to_ptr.vmem [resolvable:$true] %s703_s0 }
 0x34f   : > { %s3076_s4 = sld [smem:[#allocation109_spill]]  ;;  %s1965_s10 = scalar_lea.vmem %s704_s0, 128 }
 0x350   : > { %659 = vadd.xlane.f32.xlu0 %v658_v2  ;;  %v662_v3 = vmul.f32 %v658_v2, %v658_v2  ;;  %s3077_s1 = sld [smem:[#allocation110_spill]]  ;;  %p1966_p0 = scmp.ne.s32.totalorder %s704_s0, %s1965_s10 }
 0x351   : > { %s2051_s26 = smov [#allocation8]  }
 0x352   : > { %p1967_p7 = pnand %p1966_p0, %p2131_p10  ;;  %s1969_s27 = sshll.u32 %s2051_s26, 4  ;;  %s1970_s27 = int_to_ptr.vmem [resolvable:$false] %s1969_s27 }
 0x353   : > { %s3079_s19 = sand.u32 1, %s3073_s22   ;;  %s1971_s20 = scalar_lea.vmem %s1970_s27, 256 }
 0x354   : > { %663 = vadd.xlane.f32.xlu0 %v662_v3  ;;  %v974_v13 = vld [vmem:[%s3075_s13] ss:$0 sm:$0xff]  ;;  %s690_s29 = scalar_lea.sflag [#allocation9], %s3079_s19  ;;  %p1968_p9 = pneg %p1967_p7 }
 0x355   : > { %v975_v15 = vld [vmem:[%s3076_s4] ss:$0 sm:$0xff]  ;;  %p1972_p12 = scmp.lt.s32.totalorder %s704_s0, %s1970_s27  ;;  %p1973_p11 = scmp.lt.s32.totalorder %s1971_s20, %s1965_s10 }
 0x356   : > { %s3078_s12 = smov %s3077_s1  ;;  %s701_s5 = scalar_lea.hbm %s3077_s1, %s977_s14 }
 0x357   : > { %p1974_p1 = por %p1973_p11, %p1972_p12 }
 0x359   : > { %p1975_p13 = pnand %p1974_p1, %p1968_p9 }
 0x3d9   : > { %v660_v4 = vpop.xlane.xlu0 %659 }
 0x3da   : > { %v661_v5 = vmul.f32 0.0078125, %v660_v4 }
 0x3dc   : > { %v666_v7 = vmul.f32 %v661_v5, %v661_v5  ;;  %v670_v11 = vsub.f32 %v658_v2, %v661_v5 }
 0x3dd   : > { %v664_v6 = vpop.xlane.xlu0 %663 }
 0x3de   : > { %v665_v8 = vmul.f32 0.0078125, %v664_v6 }
 0x3e0   : > { %v667_v9 = vsub.f32 %v665_v8, %v666_v7 }
 0x3e2   : > { %v668_v10 = vadd.f32 1e-12, %v667_v9 }
 0x3e4   : > { %1111 = vrsqrt.f32 %v668_v10 }
 0x3f1   : > { %v1112_v12 = vpop.eup %1111 }
 0x3f2   : > { %v671_v14 = vmul.f32 %v1112_v12, %v670_v11 }
 0x3f4   : > { %v679_v16 = vmul.f32 %v974_v13, %v671_v14 }
 0x3f6   : > { %v687_v17 = vadd.f32 %v975_v15, %v679_v16 }
 0x3f8   : > { %688 = vst [vmem:[%s133_s23] sm:$0xff] %v687_v17 }
 0x3f9   : > { %1978 = shalt.err (!%p1975_p13)
}
 0x3fa   : > { %s1979_s18 = scalar_lea.hbm %s701_s5, 128  ;;  %s1983_s23 = scalar_lea.hbm %s3078_s12, 256 }
 0x3fb   : > { %p1980_p2 = scmp.ne.s32.totalorder %s701_s5, %s1979_s18  ;;  %p1984_p4 = scmp.lt.s32.totalorder %s701_s5, %s3078_s12 }
 0x3fc   : > { %p1985_p6 = scmp.lt.s32.totalorder %s1983_s23, %s1979_s18 }
 0x3fd   : > { %p1981_p3 = pnand %p1980_p2, %p2131_p10 }
 0x3fe   : > { %p1986_p8 = por %p1985_p6, %p1984_p4 }
 0x3ff   : > { %p1982_p5 = pneg %p1981_p3 }
 0x401   : > { %p1987_p0 = pnand %p1986_p8, %p1982_p5 }
 0x403   : > { %1990 = shalt.err (!%p1987_p0)
}
 0x404   : > { %1052 = dma.vmem_to_hbm [thread:$0]  (%p2131_p10), %s704_s0, 128, %s701_s5, %s690_s29  }
 0x405 PF: > { %s3080_s17 = sld [smem:[#allocation99_spill]] }
 0x406   : > { %s3081_s6 = sld [smem:[#allocation96_spill]] }
 0x407   : > { %s3082_s22 = sld [smem:[#allocation104_spill]] }
 0x40b   : > { %p1060_p7 = scmp.ge.s32.totalorder %s3080_s17, 2 }
 0x40c   : > { %s715_s21 = sand.u32 1, %s3081_s6  }
 0x40d   : > { %p3083_p9 = scmp.ne.s32.totalorder %s3082_s22, 0  ;;  %s716_s24 = scalar_lea.sflag [#allocation9], %s715_s21 }
 0x40f   : > { %p1055_p12 = pnand %p1060_p7, %p3083_p9 }
 0x411   : > { %p1056_p11 = pneg %p1055_p12 }
 0x413   : > { %2014 = dma.done.wait (%p1056_p11), %s716_s24, 128  }
 0x414   : > { %2016 = vsyncadd (%p1056_p11), %s716_s24, 4294967168  ;;  %s3084_s30 = sld [smem:[#allocation101_spill]] }
 0x415   : > { %s3085_s0 = sld [smem:[#allocation97_spill]] }
 0x416   : > { %s3086_s29 = sld [smem:[#allocation98_spill]] }
 0x417   : > { %s3087_s1 = sld [smem:[#allocation102_spill]] }
 0x41a   : > { %p24_p1 = scmp.ge.s32.totalorder %s3084_s30, 4  }
 0x41c   :  { %26 = sbr.rel (!%p24_p1) target bundleno = 20 (0x14), region = 268 }
 0x421   :  { %721 = vsyncpa [#allocation9], 1 }
 0x422   :  { %723 = vsyncpa [#allocation9 + $0x1], 1 }
 0x423   :  { %724 = vsyncmov [#allocation4] }
 0x426   :  { %s725_s11 = vpop.sfrf %724 }
 0x427   :  { %p980_p10 = scmp.ne.s32.totalorder %s725_s11, 0 }
 0x429   :  { %729 = shalt.err (%p980_p10)  }
 0x42a   :  { %731 = vsyncmov [#allocation4 + $0x1] }
 0x42d   :  { %s732_s13 = vpop.sfrf %731 }
 0x42e   :  { %p981_p13 = scmp.ne.s32.totalorder %s732_s13, 0 }
 0x430   :  { %736 = shalt.err (%p981_p13)  }
 0x431   :  { %738 = vsyncmov [#allocation4 + $0x2] }
 0x434   :  { %s739_s15 = vpop.sfrf %738 }
 0x435   :  { %p982_p2 = scmp.ne.s32.totalorder %s739_s15, 0 }
 0x437   :  { %743 = shalt.err (%p982_p2)  }
 0x438   :  { %745 = vsyncmov [#allocation4 + $0x3] }
 0x43b   :  { %s746_s16 = vpop.sfrf %745 }
 0x43c   :  { %p983_p3 = scmp.ne.s32.totalorder %s746_s16, 0 }
 0x43e   :  { %750 = shalt.err (%p983_p3)  }

</bundles_post_ra>
